<compile_context>
chip_gen: v7x
topology: tpu7x:2x2x1
jax: 0.10.0
libtpu: 0.0.40
codegen_flags: <defaults>
</compile_context>

<pallas_src>
import functools

import jax
import jax.numpy as jnp
from jax.experimental import pallas as pl
from jax.experimental.pallas import tpu as pltpu

EPS = 1e-5


def _double_conv_kernel(x_ref, w1_ref, g1_ref, be1_ref, m1_ref,
                        w2_ref, g2_ref, be2_ref, m2_ref, sel_ref,
                        o_ref, col1_ref, y1_ref, col2_ref, y2_ref,
                        *, n, h, w, k):
    """Fused conv-bn-relu x2 + 2x2 maxpool over lane-dense (C, flat) slabs.

    Activations keep the flattened per-image H*W axis (row stride = W) on the
    128-lane dim at image offsets nn*H*W; channels (and stacked conv taps) sit
    on sublanes.  Columns whose conv window wraps a row edge (and the unwritten
    inter-image gap columns of the scratches) hold junk; they are masked out of
    the BN statistics and are never read by any valid downstream position.
    """
    hw = h * w
    oh1, ow1 = h - k + 1, w - k + 1            # conv1 output spatial dims
    oh2, ow2 = oh1 - k + 1, ow1 - k + 1        # conv2 output spatial dims
    hp, wp = oh2 // 2, ow2 // 2                # pooled output spatial dims
    p1_img = (oh1 - 1) * w + ow1               # per-image flat extent, conv1 out
    p2_img = (oh2 - 1) * w + ow2               # per-image flat extent, conv2 out
    pq_img = 2 * (hp - 1) * w + 2 * (wp - 1) + 1   # pool-anchor flat extent
    ci = x_ref.shape[1]
    ch = w1_ref.shape[0]

    def stage(read_tap, col_ref, cin, p_img):
        # im2col: stack the K*K taps along the contraction (sublane) dim so the
        # whole tap+channel contraction becomes a single MXU matmul.  Every tap
        # is an offset vld from a Ref, never a lane-slice of a vreg value.
        for nn in range(n):
            for dy in range(k):
                for dx in range(k):
                    tap = dy * k + dx
                    col_ref[tap * cin:(tap + 1) * cin,
                            nn * hw:nn * hw + p_img] = read_tap(nn, dy * w + dx, p_img)

    def bn_relu(acc, g_ref, be_ref, mask_ref, cnt):
        # Train-mode BatchNorm (biased variance) over valid positions, single
        # pass.  The wrapper precomputes the mask; jnp.where (not multiply)
        # keeps uninitialized gap columns (possibly NaN) out of the sums.
        c = acc.shape[0]
        m = jnp.where(mask_ref[...] > 0.5, acc, 0.0)
        # Fused lane reduction: stack [m, m*m] on sublanes -> one cross-lane sum.
        s = jnp.sum(jnp.concatenate([m, m * m], axis=0), axis=1, keepdims=True)
        inv_cnt = 1.0 / float(cnt)
        mean = s[:c] * inv_cnt
        var = s[c:] * inv_cnt - mean * mean
        scale = g_ref[...] * jax.lax.rsqrt(var + EPS)     # rsqrt -> EUP slot
        shift = be_ref[...] - mean * scale
        return jnp.maximum(acc * scale + shift, 0.0)

    # ---- conv1 -> bn1 -> relu: one MXU contraction over K*K*Ci ----
    stage(lambda nn, off, p: x_ref[nn, :, off:off + p], col1_ref, ci, p1_img)
    acc1 = jnp.dot(w1_ref[...], col1_ref[...], preferred_element_type=jnp.float32)
    y1_ref[...] = bn_relu(acc1, g1_ref, be1_ref, m1_ref,
                          n * oh1 * ow1).astype(y1_ref.dtype)

    # ---- conv2 -> bn2 -> relu: taps read from the y1 VMEM scratch ----
    stage(lambda nn, off, p: y1_ref[:, nn * hw + off:nn * hw + off + p],
          col2_ref, ch, p2_img)
    acc2 = jnp.dot(w2_ref[...], col2_ref[...], preferred_element_type=jnp.float32)
    y2_ref[...] = bn_relu(acc2, g2_ref, be2_ref, m2_ref, n * oh2 * ow2)

    # ---- MaxPool2d((2, 2), stride 2) ----
    # Elementwise max of 4 lane-shifted taps read from the y2 scratch, then the
    # stride-2 anchor decimation as a 0/1-selection MXU matmul, giving a dense
    # per-image (Co, Hp*Wp) output block (no wrapper-side gather / transpose).
    for nn in range(n):
        b0 = nn * hw
        pf = jnp.maximum(
            jnp.maximum(y2_ref[:, b0:b0 + pq_img],
                        y2_ref[:, b0 + 1:b0 + 1 + pq_img]),
            jnp.maximum(y2_ref[:, b0 + w:b0 + w + pq_img],
                        y2_ref[:, b0 + w + 1:b0 + w + 1 + pq_img]))
        o_ref[nn, :, :] = jnp.dot(pf, sel_ref[...],
                                  preferred_element_type=jnp.float32
                                  ).astype(o_ref.dtype)


def double_conv_layer(x_nchw, params, *, ksize=3, mxu_dtype=jnp.float32):
    """PyTorch-compatible wrapper: NCHW in, NCHW out (train-mode BN stats).

    mxu_dtype=jnp.bfloat16 uses bf16 MXU inputs (recommended on v6e/v7x);
    accumulation and all BatchNorm math remain f32.
    """
    w1, b1, g1, be1, w2, b2, g2, be2 = params
    del b1, b2  # conv bias is exactly cancelled by train-mode BatchNorm
    n, ci, h, w = x_nchw.shape
    ch, co = w1.shape[0], w2.shape[0]
    k = ksize
    hw = h * w
    oh1, ow1 = h - k + 1, w - k + 1
    oh2, ow2 = oh1 - k + 1, ow1 - k + 1
    assert oh1 > 0 and ow1 > 0 and oh2 > 0 and ow2 > 0
    assert oh2 % 2 == 0 and ow2 % 2 == 0, "MaxPool2d((2,2)) needs even conv2 dims"
    hp, wp = oh2 // 2, ow2 // 2
    p1_img = (oh1 - 1) * w + ow1
    p2_img = (oh2 - 1) * w + ow2
    pq_img = 2 * (hp - 1) * w + 2 * (wp - 1) + 1
    p1 = (n - 1) * hw + p1_img                  # total flat extent, conv1 out
    p2 = (n - 1) * hw + p2_img                  # total flat extent, conv2 out
    f32 = jnp.float32

    # NCHW -> (N, C, H*W): a contiguous (free) reshape; no wrapper transpose.
    x_in = x_nchw.reshape(n, ci, hw).astype(mxu_dtype)

    # (Cout, Cin, K, K) -> (Cout, K*K*Cin), tap-major / channel-minor, matching
    # the in-kernel im2col row order.
    def wflat(wt):
        return jnp.transpose(wt, (0, 2, 3, 1)).reshape(
            wt.shape[0], k * k * wt.shape[1]).astype(mxu_dtype)

    def colv(v):
        return v.reshape(-1, 1).astype(f32)

    # Validity masks over the flattened conv outputs (marks row-wrap junk and
    # the inter-image gap columns invalid) — precomputed here so the kernel
    # does no per-lane mod/div work.
    def valid_mask(p_tot, hv, wv):
        q = jnp.arange(p_tot, dtype=jnp.int32) % hw
        return (((q % w) < wv) & ((q // w) < hv)).astype(f32)[None, :]

    # 0/1 selection matrix: stride-2 pool-anchor decimation as an MXU matmul.
    j = jnp.arange(hp * wp, dtype=jnp.int32)
    anchors = 2 * (j // wp) * w + 2 * (j % wp)
    sel = (jnp.arange(pq_img, dtype=jnp.int32)[:, None]
           == anchors[None, :]).astype(f32)

    # TODO(synk): to scale past this toy size (and use both v7x TensorCores),
    # add a ("parallel", ...) grid over N / output-row tiles with a two-pass BN
    # (stats kernel + normalize kernel, or a cross-tile SMEM reduction), size
    # tiles for 64 MiB (v7x) vs 128 MiB (v5e/v6e) VMEM and set vmem_limit_bytes.
    out = pl.pallas_call(
        functools.partial(_double_conv_kernel, n=n, h=h, w=w, k=k),
        out_shape=jax.ShapeDtypeStruct((n, co, hp * wp), f32),
        in_specs=[pl.BlockSpec(memory_space=pltpu.MemorySpace.VMEM)] * 10,
        out_specs=pl.BlockSpec(memory_space=pltpu.MemorySpace.VMEM),
        scratch_shapes=[
            pltpu.VMEM((k * k * ci, p1), mxu_dtype),   # col1: conv1 im2col taps
            pltpu.VMEM((ch, p1), mxu_dtype),           # y1:   conv1->bn->relu
            pltpu.VMEM((k * k * ch, p2), mxu_dtype),   # col2: conv2 im2col taps
            pltpu.VMEM((co, p2), f32),                 # y2:   conv2->bn->relu
        ],
    )(x_in, wflat(w1), colv(g1), colv(be1), valid_mask(p1, oh1, ow1),
      wflat(w2), colv(g2), colv(be2), valid_mask(p2, oh2, ow2), sel)

    # (N, Co, Hp*Wp) -> (N, Co, Hp, Wp): contiguous (free) reshape.
    return out.reshape(n, co, hp, wp)


def _reference_forward(x, w1, b1, g1, be1, w2, b2, g2, be2):
    """Pure-JAX reference mirroring the PyTorch forward (train-mode BN)."""
    def conv(x, w, b):
        y = jax.lax.conv_general_dilated(
            x, w, window_strides=(1, 1), padding='VALID',
            dimension_numbers=('NCHW', 'OIHW', 'NCHW'))
        return y + b[None, :, None, None]

    def bn(x, g, be):
        m = jnp.mean(x, axis=(0, 2, 3), keepdims=True)
        v = jnp.mean((x - m) ** 2, axis=(0, 2, 3), keepdims=True)
        return (x - m) * jax.lax.rsqrt(v + EPS) * g[None, :, None, None] \
            + be[None, :, None, None]

    y = jnp.maximum(bn(conv(x, w1, b1), g1, be1), 0.0)
    y = jnp.maximum(bn(conv(y, w2, b2), g2, be2), 0.0)
    nb, cb, hb, wb = y.shape
    return jnp.max(y.reshape(nb, cb, hb // 2, 2, wb // 2, 2), axis=(3, 5))


if __name__ == "__main__":
    key = jax.random.PRNGKey(0)
    ks = jax.random.split(key, 9)

    N, Ci, H, W = 2, 4, 16, 16          # small CIFAR-like input
    Ch, Co, K = 8, 8, 3                 # hchan, ochan, ksize

    x = jax.random.normal(ks[0], (N, Ci, H, W), jnp.float32)
    # Deterministic synthetic parameters (shapes from the module __init__).
    w1 = 0.1 * jax.random.normal(ks[1], (Ch, Ci, K, K), jnp.float32)
    b1 = 0.1 * jax.random.normal(ks[2], (Ch,), jnp.float32)
    g1 = 1.0 + 0.1 * jax.random.normal(ks[3], (Ch,), jnp.float32)
    be1 = 0.1 * jax.random.normal(ks[4], (Ch,), jnp.float32)
    w2 = 0.1 * jax.random.normal(ks[5], (Co, Ch, K, K), jnp.float32)
    b2 = 0.1 * jax.random.normal(ks[6], (Co,), jnp.float32)
    g2 = 1.0 + 0.1 * jax.random.normal(ks[7], (Co,), jnp.float32)
    be2 = 0.1 * jax.random.normal(ks[8], (Co,), jnp.float32)

    params = (w1, b1, g1, be1, w2, b2, g2, be2)
    ref = _reference_forward(x, *params)

    # f32 MXU path: tight tolerance vs the f32 reference.
    out = jax.block_until_ready(double_conv_layer(x, params, ksize=K))
    assert out.shape == ref.shape == (N, Co, 6, 6), (out.shape, ref.shape)
    assert jnp.allclose(out, ref, atol=2e-4, rtol=2e-4), \
        float(jnp.max(jnp.abs(out - ref)))

    # bf16 MXU path (recommended on v6e/v7x): looser tolerance vs f32 reference.
    out_bf16 = jax.block_until_ready(
        double_conv_layer(x, params, ksize=K, mxu_dtype=jnp.bfloat16))
    assert jnp.allclose(out_bf16, ref, atol=5e-2, rtol=5e-2), \
        float(jnp.max(jnp.abs(out_bf16 - ref)))

    print("KERNEL_OK")
</pallas_src>

<mosaic_0001>
module attributes {stable_mosaic.version = 11 : i64} {
  func.func @_double_conv_kernel(%arg0: memref<2x4x256xf32, #tpu.memory_space<vmem>>, %arg1: memref<8x36xf32, #tpu.memory_space<vmem>>, %arg2: memref<8x1xf32, #tpu.memory_space<vmem>>, %arg3: memref<8x1xf32, #tpu.memory_space<vmem>>, %arg4: memref<1x478xf32, #tpu.memory_space<vmem>>, %arg5: memref<8x72xf32, #tpu.memory_space<vmem>>, %arg6: memref<8x1xf32, #tpu.memory_space<vmem>>, %arg7: memref<8x1xf32, #tpu.memory_space<vmem>>, %arg8: memref<1x444xf32, #tpu.memory_space<vmem>>, %arg9: memref<171x36xf32, #tpu.memory_space<vmem>>, %arg10: memref<2x8x36xf32, #tpu.memory_space<vmem>>, %arg11: memref<36x478xf32, #tpu.memory_space<vmem>>, %arg12: memref<8x478xf32, #tpu.memory_space<vmem>>, %arg13: memref<72x444xf32, #tpu.memory_space<vmem>>, %arg14: memref<8x444xf32, #tpu.memory_space<vmem>>) attributes {dimension_semantics = [], scalar_prefetch = 0 : i64, scratch_operands = 4 : i64, tpu.core_type = #tpu.core_type<tc>} {
    %c0 = arith.constant 0 : index
    %c0_0 = arith.constant 0 : index
    %c0_1 = arith.constant 0 : index
    %0 = vector.load %arg0[%c0, %c0_0, %c0_1] : memref<2x4x256xf32, #tpu.memory_space<vmem>>, vector<1x4x222xf32>
    %1 = vector.shape_cast %0 : vector<1x4x222xf32> to vector<4x222xf32>
    %c0_2 = arith.constant 0 : index
    %c0_3 = arith.constant 0 : index
    %2 = vector.load %arg11[%c0_2, %c0_3] : memref<36x478xf32, #tpu.memory_space<vmem>>, vector<4x222xf32>
    tpu.vector_store %arg11[%c0_2, %c0_3], %1 {strides = array<i32>} : memref<36x478xf32, #tpu.memory_space<vmem>>, vector<4x222xf32>,
    %c0_4 = arith.constant 0 : index
    %c0_5 = arith.constant 0 : index
    %c1 = arith.constant 1 : index
    %3 = vector.load %arg0[%c0_4, %c0_5, %c1] : memref<2x4x256xf32, #tpu.memory_space<vmem>>, vector<1x4x222xf32>
    %4 = vector.shape_cast %3 : vector<1x4x222xf32> to vector<4x222xf32>
    %c4 = arith.constant 4 : index
    %c0_6 = arith.constant 0 : index
    %5 = vector.load %arg11[%c4, %c0_6] : memref<36x478xf32, #tpu.memory_space<vmem>>, vector<4x222xf32>
    tpu.vector_store %arg11[%c4, %c0_6], %4 {strides = array<i32>} : memref<36x478xf32, #tpu.memory_space<vmem>>, vector<4x222xf32>,
    %c0_7 = arith.constant 0 : index
    %c0_8 = arith.constant 0 : index
    %c2 = arith.constant 2 : index
    %6 = vector.load %arg0[%c0_7, %c0_8, %c2] : memref<2x4x256xf32, #tpu.memory_space<vmem>>, vector<1x4x222xf32>
    %7 = vector.shape_cast %6 : vector<1x4x222xf32> to vector<4x222xf32>
    %c8 = arith.constant 8 : index
    %c0_9 = arith.constant 0 : index
    %8 = vector.load %arg11[%c8, %c0_9] : memref<36x478xf32, #tpu.memory_space<vmem>>, vector<4x222xf32>
    tpu.vector_store %arg11[%c8, %c0_9], %7 {strides = array<i32>} : memref<36x478xf32, #tpu.memory_space<vmem>>, vector<4x222xf32>,
    %c0_10 = arith.constant 0 : index
    %c0_11 = arith.constant 0 : index
    %c16 = arith.constant 16 : index
    %9 = vector.load %arg0[%c0_10, %c0_11, %c16] : memref<2x4x256xf32, #tpu.memory_space<vmem>>, vector<1x4x222xf32>
    %10 = vector.shape_cast %9 : vector<1x4x222xf32> to vector<4x222xf32>
    %c12 = arith.constant 12 : index
    %c0_12 = arith.constant 0 : index
    %11 = vector.load %arg11[%c12, %c0_12] : memref<36x478xf32, #tpu.memory_space<vmem>>, vector<4x222xf32>
    tpu.vector_store %arg11[%c12, %c0_12], %10 {strides = array<i32>} : memref<36x478xf32, #tpu.memory_space<vmem>>, vector<4x222xf32>,
    %c0_13 = arith.constant 0 : index
    %c0_14 = arith.constant 0 : index
    %c17 = arith.constant 17 : index
    %12 = vector.load %arg0[%c0_13, %c0_14, %c17] : memref<2x4x256xf32, #tpu.memory_space<vmem>>, vector<1x4x222xf32>
    %13 = vector.shape_cast %12 : vector<1x4x222xf32> to vector<4x222xf32>
    %c16_15 = arith.constant 16 : index
    %c0_16 = arith.constant 0 : index
    %14 = vector.load %arg11[%c16_15, %c0_16] : memref<36x478xf32, #tpu.memory_space<vmem>>, vector<4x222xf32>
    tpu.vector_store %arg11[%c16_15, %c0_16], %13 {strides = array<i32>} : memref<36x478xf32, #tpu.memory_space<vmem>>, vector<4x222xf32>,
    %c0_17 = arith.constant 0 : index
    %c0_18 = arith.constant 0 : index
    %c18 = arith.constant 18 : index
    %15 = vector.load %arg0[%c0_17, %c0_18, %c18] : memref<2x4x256xf32, #tpu.memory_space<vmem>>, vector<1x4x222xf32>
    %16 = vector.shape_cast %15 : vector<1x4x222xf32> to vector<4x222xf32>
    %c20 = arith.constant 20 : index
    %c0_19 = arith.constant 0 : index
    %17 = vector.load %arg11[%c20, %c0_19] : memref<36x478xf32, #tpu.memory_space<vmem>>, vector<4x222xf32>
    tpu.vector_store %arg11[%c20, %c0_19], %16 {strides = array<i32>} : memref<36x478xf32, #tpu.memory_space<vmem>>, vector<4x222xf32>,
    %c0_20 = arith.constant 0 : index
    %c0_21 = arith.constant 0 : index
    %c32 = arith.constant 32 : index
    %18 = vector.load %arg0[%c0_20, %c0_21, %c32] : memref<2x4x256xf32, #tpu.memory_space<vmem>>, vector<1x4x222xf32>
    %19 = vector.shape_cast %18 : vector<1x4x222xf32> to vector<4x222xf32>
    %c24 = arith.constant 24 : index
    %c0_22 = arith.constant 0 : index
    %20 = vector.load %arg11[%c24, %c0_22] : memref<36x478xf32, #tpu.memory_space<vmem>>, vector<4x222xf32>
    tpu.vector_store %arg11[%c24, %c0_22], %19 {strides = array<i32>} : memref<36x478xf32, #tpu.memory_space<vmem>>, vector<4x222xf32>,
    %c0_23 = arith.constant 0 : index
    %c0_24 = arith.constant 0 : index
    %c33 = arith.constant 33 : index
    %21 = vector.load %arg0[%c0_23, %c0_24, %c33] : memref<2x4x256xf32, #tpu.memory_space<vmem>>, vector<1x4x222xf32>
    %22 = vector.shape_cast %21 : vector<1x4x222xf32> to vector<4x222xf32>
    %c28 = arith.constant 28 : index
    %c0_25 = arith.constant 0 : index
    %23 = vector.load %arg11[%c28, %c0_25] : memref<36x478xf32, #tpu.memory_space<vmem>>, vector<4x222xf32>
    tpu.vector_store %arg11[%c28, %c0_25], %22 {strides = array<i32>} : memref<36x478xf32, #tpu.memory_space<vmem>>, vector<4x222xf32>,
    %c0_26 = arith.constant 0 : index
    %c0_27 = arith.constant 0 : index
    %c34 = arith.constant 34 : index
    %24 = vector.load %arg0[%c0_26, %c0_27, %c34] : memref<2x4x256xf32, #tpu.memory_space<vmem>>, vector<1x4x222xf32>
    %25 = vector.shape_cast %24 : vector<1x4x222xf32> to vector<4x222xf32>
    %c32_28 = arith.constant 32 : index
    %c0_29 = arith.constant 0 : index
    %26 = vector.load %arg11[%c32_28, %c0_29] : memref<36x478xf32, #tpu.memory_space<vmem>>, vector<4x222xf32>
    tpu.vector_store %arg11[%c32_28, %c0_29], %25 {strides = array<i32>} : memref<36x478xf32, #tpu.memory_space<vmem>>, vector<4x222xf32>,
    %c1_30 = arith.constant 1 : index
    %c0_31 = arith.constant 0 : index
    %c0_32 = arith.constant 0 : index
    %27 = vector.load %arg0[%c1_30, %c0_31, %c0_32] : memref<2x4x256xf32, #tpu.memory_space<vmem>>, vector<1x4x222xf32>
    %28 = vector.shape_cast %27 : vector<1x4x222xf32> to vector<4x222xf32>
    %c0_33 = arith.constant 0 : index
    %c256 = arith.constant 256 : index
    %29 = vector.load %arg11[%c0_33, %c256] : memref<36x478xf32, #tpu.memory_space<vmem>>, vector<4x222xf32>
    tpu.vector_store %arg11[%c0_33, %c256], %28 {strides = array<i32>} : memref<36x478xf32, #tpu.memory_space<vmem>>, vector<4x222xf32>,
    %c1_34 = arith.constant 1 : index
    %c0_35 = arith.constant 0 : index
    %c1_36 = arith.constant 1 : index
    %30 = vector.load %arg0[%c1_34, %c0_35, %c1_36] : memref<2x4x256xf32, #tpu.memory_space<vmem>>, vector<1x4x222xf32>
    %31 = vector.shape_cast %30 : vector<1x4x222xf32> to vector<4x222xf32>
    %c4_37 = arith.constant 4 : index
    %c256_38 = arith.constant 256 : index
    %32 = vector.load %arg11[%c4_37, %c256_38] : memref<36x478xf32, #tpu.memory_space<vmem>>, vector<4x222xf32>
    tpu.vector_store %arg11[%c4_37, %c256_38], %31 {strides = array<i32>} : memref<36x478xf32, #tpu.memory_space<vmem>>, vector<4x222xf32>,
    %c1_39 = arith.constant 1 : index
    %c0_40 = arith.constant 0 : index
    %c2_41 = arith.constant 2 : index
    %33 = vector.load %arg0[%c1_39, %c0_40, %c2_41] : memref<2x4x256xf32, #tpu.memory_space<vmem>>, vector<1x4x222xf32>
    %34 = vector.shape_cast %33 : vector<1x4x222xf32> to vector<4x222xf32>
    %c8_42 = arith.constant 8 : index
    %c256_43 = arith.constant 256 : index
    %35 = vector.load %arg11[%c8_42, %c256_43] : memref<36x478xf32, #tpu.memory_space<vmem>>, vector<4x222xf32>
    tpu.vector_store %arg11[%c8_42, %c256_43], %34 {strides = array<i32>} : memref<36x478xf32, #tpu.memory_space<vmem>>, vector<4x222xf32>,
    %c1_44 = arith.constant 1 : index
    %c0_45 = arith.constant 0 : index
    %c16_46 = arith.constant 16 : index
    %36 = vector.load %arg0[%c1_44, %c0_45, %c16_46] : memref<2x4x256xf32, #tpu.memory_space<vmem>>, vector<1x4x222xf32>
    %37 = vector.shape_cast %36 : vector<1x4x222xf32> to vector<4x222xf32>
    %c12_47 = arith.constant 12 : index
    %c256_48 = arith.constant 256 : index
    %38 = vector.load %arg11[%c12_47, %c256_48] : memref<36x478xf32, #tpu.memory_space<vmem>>, vector<4x222xf32>
    tpu.vector_store %arg11[%c12_47, %c256_48], %37 {strides = array<i32>} : memref<36x478xf32, #tpu.memory_space<vmem>>, vector<4x222xf32>,
    %c1_49 = arith.constant 1 : index
    %c0_50 = arith.constant 0 : index
    %c17_51 = arith.constant 17 : index
    %39 = vector.load %arg0[%c1_49, %c0_50, %c17_51] : memref<2x4x256xf32, #tpu.memory_space<vmem>>, vector<1x4x222xf32>
    %40 = vector.shape_cast %39 : vector<1x4x222xf32> to vector<4x222xf32>
    %c16_52 = arith.constant 16 : index
    %c256_53 = arith.constant 256 : index
    %41 = vector.load %arg11[%c16_52, %c256_53] : memref<36x478xf32, #tpu.memory_space<vmem>>, vector<4x222xf32>
    tpu.vector_store %arg11[%c16_52, %c256_53], %40 {strides = array<i32>} : memref<36x478xf32, #tpu.memory_space<vmem>>, vector<4x222xf32>,
    %c1_54 = arith.constant 1 : index
    %c0_55 = arith.constant 0 : index
    %c18_56 = arith.constant 18 : index
    %42 = vector.load %arg0[%c1_54, %c0_55, %c18_56] : memref<2x4x256xf32, #tpu.memory_space<vmem>>, vector<1x4x222xf32>
    %43 = vector.shape_cast %42 : vector<1x4x222xf32> to vector<4x222xf32>
    %c20_57 = arith.constant 20 : index
    %c256_58 = arith.constant 256 : index
    %44 = vector.load %arg11[%c20_57, %c256_58] : memref<36x478xf32, #tpu.memory_space<vmem>>, vector<4x222xf32>
    tpu.vector_store %arg11[%c20_57, %c256_58], %43 {strides = array<i32>} : memref<36x478xf32, #tpu.memory_space<vmem>>, vector<4x222xf32>,
    %c1_59 = arith.constant 1 : index
    %c0_60 = arith.constant 0 : index
    %c32_61 = arith.constant 32 : index
    %45 = vector.load %arg0[%c1_59, %c0_60, %c32_61] : memref<2x4x256xf32, #tpu.memory_space<vmem>>, vector<1x4x222xf32>
    %46 = vector.shape_cast %45 : vector<1x4x222xf32> to vector<4x222xf32>
    %c24_62 = arith.constant 24 : index
    %c256_63 = arith.constant 256 : index
    %47 = vector.load %arg11[%c24_62, %c256_63] : memref<36x478xf32, #tpu.memory_space<vmem>>, vector<4x222xf32>
    tpu.vector_store %arg11[%c24_62, %c256_63], %46 {strides = array<i32>} : memref<36x478xf32, #tpu.memory_space<vmem>>, vector<4x222xf32>,
    %c1_64 = arith.constant 1 : index
    %c0_65 = arith.constant 0 : index
    %c33_66 = arith.constant 33 : index
    %48 = vector.load %arg0[%c1_64, %c0_65, %c33_66] : memref<2x4x256xf32, #tpu.memory_space<vmem>>, vector<1x4x222xf32>
    %49 = vector.shape_cast %48 : vector<1x4x222xf32> to vector<4x222xf32>
    %c28_67 = arith.constant 28 : index
    %c256_68 = arith.constant 256 : index
    %50 = vector.load %arg11[%c28_67, %c256_68] : memref<36x478xf32, #tpu.memory_space<vmem>>, vector<4x222xf32>
    tpu.vector_store %arg11[%c28_67, %c256_68], %49 {strides = array<i32>} : memref<36x478xf32, #tpu.memory_space<vmem>>, vector<4x222xf32>,
    %c1_69 = arith.constant 1 : index
    %c0_70 = arith.constant 0 : index
    %c34_71 = arith.constant 34 : index
    %51 = vector.load %arg0[%c1_69, %c0_70, %c34_71] : memref<2x4x256xf32, #tpu.memory_space<vmem>>, vector<1x4x222xf32>
    %52 = vector.shape_cast %51 : vector<1x4x222xf32> to vector<4x222xf32>
    %c32_72 = arith.constant 32 : index
    %c256_73 = arith.constant 256 : index
    %53 = vector.load %arg11[%c32_72, %c256_73] : memref<36x478xf32, #tpu.memory_space<vmem>>, vector<4x222xf32>
    tpu.vector_store %arg11[%c32_72, %c256_73], %52 {strides = array<i32>} : memref<36x478xf32, #tpu.memory_space<vmem>>, vector<4x222xf32>,
    %c0_74 = arith.constant 0 : index
    %c0_75 = arith.constant 0 : index
    %54 = vector.load %arg1[%c0_74, %c0_75] : memref<8x36xf32, #tpu.memory_space<vmem>>, vector<8x36xf32>
    %c0_76 = arith.constant 0 : index
    %c0_77 = arith.constant 0 : index
    %55 = vector.load %arg11[%c0_76, %c0_77] : memref<36x478xf32, #tpu.memory_space<vmem>>, vector<36x478xf32>
    %cst = arith.constant dense<0.000000e+00> : vector<8x478xf32>
    %56 = tpu.matmul %54, %55, %cst {dimension_numbers = #tpu.dot_dimension_numbers<[1], [0], [0], [1], [0, 0, 1, 1], [], []>} : vector<8x36xf32>, vector<36x478xf32>, vector<8x478xf32> -> vector<8x478xf32>
    %c0_78 = arith.constant 0 : index
    %c0_79 = arith.constant 0 : index
    %57 = vector.load %arg4[%c0_78, %c0_79] : memref<1x478xf32, #tpu.memory_space<vmem>>, vector<1x478xf32>
    %cst_80 = arith.constant 5.000000e-01 : f32
    %58 = vector.broadcast %cst_80 : f32 to vector<1x478xf32>
    %59 = arith.cmpf ogt, %57, %58 : vector<1x478xf32>
    %cst_81 = arith.constant 0.000000e+00 : f32
    %60 = vector.shape_cast %59 : vector<1x478xi1> to vector<1x478xi1>
    %61 = vector.broadcast %60 : vector<1x478xi1> to vector<8x478xi1>
    %62 = vector.broadcast %cst_81 : f32 to vector<8x478xf32>
    %63 = arith.select %61, %56, %62 : vector<8x478xi1>, vector<8x478xf32>
    %64 = arith.mulf %63, %63 : vector<8x478xf32>
    %65 = tpu.concatenate %63, %64 in 0 : vector<8x478xf32>, vector<8x478xf32> -> vector<16x478xf32>
    %cst_82 = arith.constant dense<0.000000e+00> : vector<16xf32>
    %66 = vector.multi_reduction <add>, %65, %cst_82 [1] : vector<16x478xf32> to vector<16xf32>
    %67 = vector.shape_cast %66 : vector<16xf32> to vector<16x1xf32>
    %68 = vector.extract_strided_slice %67 {offsets = [0, 0], sizes = [8, 1], strides = [1, 1]} : vector<16x1xf32> to vector<8x1xf32>
    %cst_83 = arith.constant 0.00255102036 : f32
    %69 = vector.broadcast %cst_83 : f32 to vector<8x1xf32>
    %70 = arith.mulf %68, %69 : vector<8x1xf32>
    %71 = vector.extract_strided_slice %67 {offsets = [8, 0], sizes = [8, 1], strides = [1, 1]} : vector<16x1xf32> to vector<8x1xf32>
    %cst_84 = arith.constant 0.00255102036 : f32
    %72 = vector.broadcast %cst_84 : f32 to vector<8x1xf32>
    %73 = arith.mulf %71, %72 : vector<8x1xf32>
    %74 = arith.mulf %70, %70 : vector<8x1xf32>
    %75 = arith.subf %73, %74 : vector<8x1xf32>
    %c0_85 = arith.constant 0 : index
    %c0_86 = arith.constant 0 : index
    %76 = vector.load %arg2[%c0_85, %c0_86] : memref<8x1xf32, #tpu.memory_space<vmem>>, vector<8x1xf32>
    %cst_87 = arith.constant 9.99999974E-6 : f32
    %77 = vector.broadcast %cst_87 : f32 to vector<8x1xf32>
    %78 = arith.addf %75, %77 : vector<8x1xf32>
    %79 = math.rsqrt %78 : vector<8x1xf32>
    %80 = arith.mulf %76, %79 : vector<8x1xf32>
    %c0_88 = arith.constant 0 : index
    %c0_89 = arith.constant 0 : index
    %81 = vector.load %arg3[%c0_88, %c0_89] : memref<8x1xf32, #tpu.memory_space<vmem>>, vector<8x1xf32>
    %82 = arith.mulf %70, %80 : vector<8x1xf32>
    %83 = arith.subf %81, %82 : vector<8x1xf32>
    %84 = vector.broadcast %80 : vector<8x1xf32> to vector<8x478xf32>
    %85 = arith.mulf %56, %84 : vector<8x478xf32>
    %86 = vector.broadcast %83 : vector<8x1xf32> to vector<8x478xf32>
    %87 = arith.addf %85, %86 : vector<8x478xf32>
    %cst_90 = arith.constant 0.000000e+00 : f32
    %88 = vector.broadcast %cst_90 : f32 to vector<8x478xf32>
    %89 = arith.maximumf %87, %88 : vector<8x478xf32>
    %c0_91 = arith.constant 0 : index
    %c0_92 = arith.constant 0 : index
    %90 = vector.load %arg12[%c0_91, %c0_92] : memref<8x478xf32, #tpu.memory_space<vmem>>, vector<8x478xf32>
    tpu.vector_store %arg12[%c0_91, %c0_92], %89 {strides = array<i32>} : memref<8x478xf32, #tpu.memory_space<vmem>>, vector<8x478xf32>,
    %c0_93 = arith.constant 0 : index
    %c0_94 = arith.constant 0 : index
    %91 = vector.load %arg12[%c0_93, %c0_94] : memref<8x478xf32, #tpu.memory_space<vmem>>, vector<8x188xf32>
    %c0_95 = arith.constant 0 : index
    %c0_96 = arith.constant 0 : index
    %92 = vector.load %arg13[%c0_95, %c0_96] : memref<72x444xf32, #tpu.memory_space<vmem>>, vector<8x188xf32>
    tpu.vector_store %arg13[%c0_95, %c0_96], %91 {strides = array<i32>} : memref<72x444xf32, #tpu.memory_space<vmem>>, vector<8x188xf32>,
    %c0_97 = arith.constant 0 : index
    %c1_98 = arith.constant 1 : index
    %93 = vector.load %arg12[%c0_97, %c1_98] : memref<8x478xf32, #tpu.memory_space<vmem>>, vector<8x188xf32>
    %c8_99 = arith.constant 8 : index
    %c0_100 = arith.constant 0 : index
    %94 = vector.load %arg13[%c8_99, %c0_100] : memref<72x444xf32, #tpu.memory_space<vmem>>, vector<8x188xf32>
    tpu.vector_store %arg13[%c8_99, %c0_100], %93 {strides = array<i32>} : memref<72x444xf32, #tpu.memory_space<vmem>>, vector<8x188xf32>,
    %c0_101 = arith.constant 0 : index
    %c2_102 = arith.constant 2 : index
    %95 = vector.load %arg12[%c0_101, %c2_102] : memref<8x478xf32, #tpu.memory_space<vmem>>, vector<8x188xf32>
    %c16_103 = arith.constant 16 : index
    %c0_104 = arith.constant 0 : index
    %96 = vector.load %arg13[%c16_103, %c0_104] : memref<72x444xf32, #tpu.memory_space<vmem>>, vector<8x188xf32>
    tpu.vector_store %arg13[%c16_103, %c0_104], %95 {strides = array<i32>} : memref<72x444xf32, #tpu.memory_space<vmem>>, vector<8x188xf32>,
    %c0_105 = arith.constant 0 : index
    %c16_106 = arith.constant 16 : index
    %97 = vector.load %arg12[%c0_105, %c16_106] : memref<8x478xf32, #tpu.memory_space<vmem>>, vector<8x188xf32>
    %c24_107 = arith.constant 24 : index
    %c0_108 = arith.constant 0 : index
    %98 = vector.load %arg13[%c24_107, %c0_108] : memref<72x444xf32, #tpu.memory_space<vmem>>, vector<8x188xf32>
    tpu.vector_store %arg13[%c24_107, %c0_108], %97 {strides = array<i32>} : memref<72x444xf32, #tpu.memory_space<vmem>>, vector<8x188xf32>,
    %c0_109 = arith.constant 0 : index
    %c17_110 = arith.constant 17 : index
    %99 = vector.load %arg12[%c0_109, %c17_110] : memref<8x478xf32, #tpu.memory_space<vmem>>, vector<8x188xf32>
    %c32_111 = arith.constant 32 : index
    %c0_112 = arith.constant 0 : index
    %100 = vector.load %arg13[%c32_111, %c0_112] : memref<72x444xf32, #tpu.memory_space<vmem>>, vector<8x188xf32>
    tpu.vector_store %arg13[%c32_111, %c0_112], %99 {strides = array<i32>} : memref<72x444xf32, #tpu.memory_space<vmem>>, vector<8x188xf32>,
    %c0_113 = arith.constant 0 : index
    %c18_114 = arith.constant 18 : index
    %101 = vector.load %arg12[%c0_113, %c18_114] : memref<8x478xf32, #tpu.memory_space<vmem>>, vector<8x188xf32>
    %c40 = arith.constant 40 : index
    %c0_115 = arith.constant 0 : index
    %102 = vector.load %arg13[%c40, %c0_115] : memref<72x444xf32, #tpu.memory_space<vmem>>, vector<8x188xf32>
    tpu.vector_store %arg13[%c40, %c0_115], %101 {strides = array<i32>} : memref<72x444xf32, #tpu.memory_space<vmem>>, vector<8x188xf32>,
    %c0_116 = arith.constant 0 : index
    %c32_117 = arith.constant 32 : index
    %103 = vector.load %arg12[%c0_116, %c32_117] : memref<8x478xf32, #tpu.memory_space<vmem>>, vector<8x188xf32>
    %c48 = arith.constant 48 : index
    %c0_118 = arith.constant 0 : index
    %104 = vector.load %arg13[%c48, %c0_118] : memref<72x444xf32, #tpu.memory_space<vmem>>, vector<8x188xf32>
    tpu.vector_store %arg13[%c48, %c0_118], %103 {strides = array<i32>} : memref<72x444xf32, #tpu.memory_space<vmem>>, vector<8x188xf32>,
    %c0_119 = arith.constant 0 : index
    %c33_120 = arith.constant 33 : index
    %105 = vector.load %arg12[%c0_119, %c33_120] : memref<8x478xf32, #tpu.memory_space<vmem>>, vector<8x188xf32>
    %c56 = arith.constant 56 : index
    %c0_121 = arith.constant 0 : index
    %106 = vector.load %arg13[%c56, %c0_121] : memref<72x444xf32, #tpu.memory_space<vmem>>, vector<8x188xf32>
    tpu.vector_store %arg13[%c56, %c0_121], %105 {strides = array<i32>} : memref<72x444xf32, #tpu.memory_space<vmem>>, vector<8x188xf32>,
    %c0_122 = arith.constant 0 : index
    %c34_123 = arith.constant 34 : index
    %107 = vector.load %arg12[%c0_122, %c34_123] : memref<8x478xf32, #tpu.memory_space<vmem>>, vector<8x188xf32>
    %c64 = arith.constant 64 : index
    %c0_124 = arith.constant 0 : index
    %108 = vector.load %arg13[%c64, %c0_124] : memref<72x444xf32, #tpu.memory_space<vmem>>, vector<8x188xf32>
    tpu.vector_store %arg13[%c64, %c0_124], %107 {strides = array<i32>} : memref<72x444xf32, #tpu.memory_space<vmem>>, vector<8x188xf32>,
    %c0_125 = arith.constant 0 : index
    %c256_126 = arith.constant 256 : index
    %109 = vector.load %arg12[%c0_125, %c256_126] : memref<8x478xf32, #tpu.memory_space<vmem>>, vector<8x188xf32>
    %c0_127 = arith.constant 0 : index
    %c256_128 = arith.constant 256 : index
    %110 = vector.load %arg13[%c0_127, %c256_128] : memref<72x444xf32, #tpu.memory_space<vmem>>, vector<8x188xf32>
    tpu.vector_store %arg13[%c0_127, %c256_128], %109 {strides = array<i32>} : memref<72x444xf32, #tpu.memory_space<vmem>>, vector<8x188xf32>,
    %c0_129 = arith.constant 0 : index
    %c257 = arith.constant 257 : index
    %111 = vector.load %arg12[%c0_129, %c257] : memref<8x478xf32, #tpu.memory_space<vmem>>, vector<8x188xf32>
    %c8_130 = arith.constant 8 : index
    %c256_131 = arith.constant 256 : index
    %112 = vector.load %arg13[%c8_130, %c256_131] : memref<72x444xf32, #tpu.memory_space<vmem>>, vector<8x188xf32>
    tpu.vector_store %arg13[%c8_130, %c256_131], %111 {strides = array<i32>} : memref<72x444xf32, #tpu.memory_space<vmem>>, vector<8x188xf32>,
    %c0_132 = arith.constant 0 : index
    %c258 = arith.constant 258 : index
    %113 = vector.load %arg12[%c0_132, %c258] : memref<8x478xf32, #tpu.memory_space<vmem>>, vector<8x188xf32>
    %c16_133 = arith.constant 16 : index
    %c256_134 = arith.constant 256 : index
    %114 = vector.load %arg13[%c16_133, %c256_134] : memref<72x444xf32, #tpu.memory_space<vmem>>, vector<8x188xf32>
    tpu.vector_store %arg13[%c16_133, %c256_134], %113 {strides = array<i32>} : memref<72x444xf32, #tpu.memory_space<vmem>>, vector<8x188xf32>,
    %c0_135 = arith.constant 0 : index
    %c272 = arith.constant 272 : index
    %115 = vector.load %arg12[%c0_135, %c272] : memref<8x478xf32, #tpu.memory_space<vmem>>, vector<8x188xf32>
    %c24_136 = arith.constant 24 : index
    %c256_137 = arith.constant 256 : index
    %116 = vector.load %arg13[%c24_136, %c256_137] : memref<72x444xf32, #tpu.memory_space<vmem>>, vector<8x188xf32>
    tpu.vector_store %arg13[%c24_136, %c256_137], %115 {strides = array<i32>} : memref<72x444xf32, #tpu.memory_space<vmem>>, vector<8x188xf32>,
    %c0_138 = arith.constant 0 : index
    %c273 = arith.constant 273 : index
    %117 = vector.load %arg12[%c0_138, %c273] : memref<8x478xf32, #tpu.memory_space<vmem>>, vector<8x188xf32>
    %c32_139 = arith.constant 32 : index
    %c256_140 = arith.constant 256 : index
    %118 = vector.load %arg13[%c32_139, %c256_140] : memref<72x444xf32, #tpu.memory_space<vmem>>, vector<8x188xf32>
    tpu.vector_store %arg13[%c32_139, %c256_140], %117 {strides = array<i32>} : memref<72x444xf32, #tpu.memory_space<vmem>>, vector<8x188xf32>,
    %c0_141 = arith.constant 0 : index
    %c274 = arith.constant 274 : index
    %119 = vector.load %arg12[%c0_141, %c274] : memref<8x478xf32, #tpu.memory_space<vmem>>, vector<8x188xf32>
    %c40_142 = arith.constant 40 : index
    %c256_143 = arith.constant 256 : index
    %120 = vector.load %arg13[%c40_142, %c256_143] : memref<72x444xf32, #tpu.memory_space<vmem>>, vector<8x188xf32>
    tpu.vector_store %arg13[%c40_142, %c256_143], %119 {strides = array<i32>} : memref<72x444xf32, #tpu.memory_space<vmem>>, vector<8x188xf32>,
    %c0_144 = arith.constant 0 : index
    %c288 = arith.constant 288 : index
    %121 = vector.load %arg12[%c0_144, %c288] : memref<8x478xf32, #tpu.memory_space<vmem>>, vector<8x188xf32>
    %c48_145 = arith.constant 48 : index
    %c256_146 = arith.constant 256 : index
    %122 = vector.load %arg13[%c48_145, %c256_146] : memref<72x444xf32, #tpu.memory_space<vmem>>, vector<8x188xf32>
    tpu.vector_store %arg13[%c48_145, %c256_146], %121 {strides = array<i32>} : memref<72x444xf32, #tpu.memory_space<vmem>>, vector<8x188xf32>,
    %c0_147 = arith.constant 0 : index
    %c289 = arith.constant 289 : index
    %123 = vector.load %arg12[%c0_147, %c289] : memref<8x478xf32, #tpu.memory_space<vmem>>, vector<8x188xf32>
    %c56_148 = arith.constant 56 : index
    %c256_149 = arith.constant 256 : index
    %124 = vector.load %arg13[%c56_148, %c256_149] : memref<72x444xf32, #tpu.memory_space<vmem>>, vector<8x188xf32>
    tpu.vector_store %arg13[%c56_148, %c256_149], %123 {strides = array<i32>} : memref<72x444xf32, #tpu.memory_space<vmem>>, vector<8x188xf32>,
    %c0_150 = arith.constant 0 : index
    %c290 = arith.constant 290 : index
    %125 = vector.load %arg12[%c0_150, %c290] : memref<8x478xf32, #tpu.memory_space<vmem>>, vector<8x188xf32>
    %c64_151 = arith.constant 64 : index
    %c256_152 = arith.constant 256 : index
    %126 = vector.load %arg13[%c64_151, %c256_152] : memref<72x444xf32, #tpu.memory_space<vmem>>, vector<8x188xf32>
    tpu.vector_store %arg13[%c64_151, %c256_152], %125 {strides = array<i32>} : memref<72x444xf32, #tpu.memory_space<vmem>>, vector<8x188xf32>,
    %c0_153 = arith.constant 0 : index
    %c0_154 = arith.constant 0 : index
    %127 = vector.load %arg5[%c0_153, %c0_154] : memref<8x72xf32, #tpu.memory_space<vmem>>, vector<8x72xf32>
    %c0_155 = arith.constant 0 : index
    %c0_156 = arith.constant 0 : index
    %128 = vector.load %arg13[%c0_155, %c0_156] : memref<72x444xf32, #tpu.memory_space<vmem>>, vector<72x444xf32>
    %cst_157 = arith.constant dense<0.000000e+00> : vector<8x444xf32>
    %129 = tpu.matmul %127, %128, %cst_157 {dimension_numbers = #tpu.dot_dimension_numbers<[1], [0], [0], [1], [0, 0, 1, 1], [], []>} : vector<8x72xf32>, vector<72x444xf32>, vector<8x444xf32> -> vector<8x444xf32>
    %c0_158 = arith.constant 0 : index
    %c0_159 = arith.constant 0 : index
    %130 = vector.load %arg8[%c0_158, %c0_159] : memref<1x444xf32, #tpu.memory_space<vmem>>, vector<1x444xf32>
    %cst_160 = arith.constant 5.000000e-01 : f32
    %131 = vector.broadcast %cst_160 : f32 to vector<1x444xf32>
    %132 = arith.cmpf ogt, %130, %131 : vector<1x444xf32>
    %cst_161 = arith.constant 0.000000e+00 : f32
    %133 = vector.shape_cast %132 : vector<1x444xi1> to vector<1x444xi1>
    %134 = vector.broadcast %133 : vector<1x444xi1> to vector<8x444xi1>
    %135 = vector.broadcast %cst_161 : f32 to vector<8x444xf32>
    %136 = arith.select %134, %129, %135 : vector<8x444xi1>, vector<8x444xf32>
    %137 = arith.mulf %136, %136 : vector<8x444xf32>
    %138 = tpu.concatenate %136, %137 in 0 : vector<8x444xf32>, vector<8x444xf32> -> vector<16x444xf32>
    %cst_162 = arith.constant dense<0.000000e+00> : vector<16xf32>
    %139 = vector.multi_reduction <add>, %138, %cst_162 [1] : vector<16x444xf32> to vector<16xf32>
    %140 = vector.shape_cast %139 : vector<16xf32> to vector<16x1xf32>
    %141 = vector.extract_strided_slice %140 {offsets = [0, 0], sizes = [8, 1], strides = [1, 1]} : vector<16x1xf32> to vector<8x1xf32>
    %cst_163 = arith.constant 0.00347222225 : f32
    %142 = vector.broadcast %cst_163 : f32 to vector<8x1xf32>
    %143 = arith.mulf %141, %142 : vector<8x1xf32>
    %144 = vector.extract_strided_slice %140 {offsets = [8, 0], sizes = [8, 1], strides = [1, 1]} : vector<16x1xf32> to vector<8x1xf32>
    %cst_164 = arith.constant 0.00347222225 : f32
    %145 = vector.broadcast %cst_164 : f32 to vector<8x1xf32>
    %146 = arith.mulf %144, %145 : vector<8x1xf32>
    %147 = arith.mulf %143, %143 : vector<8x1xf32>
    %148 = arith.subf %146, %147 : vector<8x1xf32>
    %c0_165 = arith.constant 0 : index
    %c0_166 = arith.constant 0 : index
    %149 = vector.load %arg6[%c0_165, %c0_166] : memref<8x1xf32, #tpu.memory_space<vmem>>, vector<8x1xf32>
    %cst_167 = arith.constant 9.99999974E-6 : f32
    %150 = vector.broadcast %cst_167 : f32 to vector<8x1xf32>
    %151 = arith.addf %148, %150 : vector<8x1xf32>
    %152 = math.rsqrt %151 : vector<8x1xf32>
    %153 = arith.mulf %149, %152 : vector<8x1xf32>
    %c0_168 = arith.constant 0 : index
    %c0_169 = arith.constant 0 : index
    %154 = vector.load %arg7[%c0_168, %c0_169] : memref<8x1xf32, #tpu.memory_space<vmem>>, vector<8x1xf32>
    %155 = arith.mulf %143, %153 : vector<8x1xf32>
    %156 = arith.subf %154, %155 : vector<8x1xf32>
    %157 = vector.broadcast %153 : vector<8x1xf32> to vector<8x444xf32>
    %158 = arith.mulf %129, %157 : vector<8x444xf32>
    %159 = vector.broadcast %156 : vector<8x1xf32> to vector<8x444xf32>
    %160 = arith.addf %158, %159 : vector<8x444xf32>
    %cst_170 = arith.constant 0.000000e+00 : f32
    %161 = vector.broadcast %cst_170 : f32 to vector<8x444xf32>
    %162 = arith.maximumf %160, %161 : vector<8x444xf32>
    %c0_171 = arith.constant 0 : index
    %c0_172 = arith.constant 0 : index
    %163 = vector.load %arg14[%c0_171, %c0_172] : memref<8x444xf32, #tpu.memory_space<vmem>>, vector<8x444xf32>
    tpu.vector_store %arg14[%c0_171, %c0_172], %162 {strides = array<i32>} : memref<8x444xf32, #tpu.memory_space<vmem>>, vector<8x444xf32>,
    %c0_173 = arith.constant 0 : index
    %c0_174 = arith.constant 0 : index
    %164 = vector.load %arg14[%c0_173, %c0_174] : memref<8x444xf32, #tpu.memory_space<vmem>>, vector<8x171xf32>
    %c0_175 = arith.constant 0 : index
    %c1_176 = arith.constant 1 : index
    %165 = vector.load %arg14[%c0_175, %c1_176] : memref<8x444xf32, #tpu.memory_space<vmem>>, vector<8x171xf32>
    %166 = arith.maximumf %164, %165 : vector<8x171xf32>
    %c0_177 = arith.constant 0 : index
    %c16_178 = arith.constant 16 : index
    %167 = vector.load %arg14[%c0_177, %c16_178] : memref<8x444xf32, #tpu.memory_space<vmem>>, vector<8x171xf32>
    %c0_179 = arith.constant 0 : index
    %c17_180 = arith.constant 17 : index
    %168 = vector.load %arg14[%c0_179, %c17_180] : memref<8x444xf32, #tpu.memory_space<vmem>>, vector<8x171xf32>
    %169 = arith.maximumf %167, %168 : vector<8x171xf32>
    %170 = arith.maximumf %166, %169 : vector<8x171xf32>
    %c0_181 = arith.constant 0 : index
    %c0_182 = arith.constant 0 : index
    %171 = vector.load %arg9[%c0_181, %c0_182] : memref<171x36xf32, #tpu.memory_space<vmem>>, vector<171x36xf32>
    %cst_183 = arith.constant dense<0.000000e+00> : vector<8x36xf32>
    %172 = tpu.matmul %170, %171, %cst_183 {dimension_numbers = #tpu.dot_dimension_numbers<[1], [0], [0], [1], [0, 0, 1, 1], [], []>} : vector<8x171xf32>, vector<171x36xf32>, vector<8x36xf32> -> vector<8x36xf32>
    %c0_184 = arith.constant 0 : index
    %c0_185 = arith.constant 0 : index
    %c0_186 = arith.constant 0 : index
    %173 = vector.load %arg10[%c0_184, %c0_185, %c0_186] : memref<2x8x36xf32, #tpu.memory_space<vmem>>, vector<1x8x36xf32>
    %174 = vector.shape_cast %173 : vector<1x8x36xf32> to vector<8x36xf32>
    %175 = vector.shape_cast %172 : vector<8x36xf32> to vector<1x8x36xf32>
    tpu.vector_store %arg10[%c0_184, %c0_185, %c0_186], %175 {strides = array<i32>} : memref<2x8x36xf32, #tpu.memory_space<vmem>>, vector<1x8x36xf32>,
    %c0_187 = arith.constant 0 : index
    %c256_188 = arith.constant 256 : index
    %176 = vector.load %arg14[%c0_187, %c256_188] : memref<8x444xf32, #tpu.memory_space<vmem>>, vector<8x171xf32>
    %c0_189 = arith.constant 0 : index
    %c257_190 = arith.constant 257 : index
    %177 = vector.load %arg14[%c0_189, %c257_190] : memref<8x444xf32, #tpu.memory_space<vmem>>, vector<8x171xf32>
    %178 = arith.maximumf %176, %177 : vector<8x171xf32>
    %c0_191 = arith.constant 0 : index
    %c272_192 = arith.constant 272 : index
    %179 = vector.load %arg14[%c0_191, %c272_192] : memref<8x444xf32, #tpu.memory_space<vmem>>, vector<8x171xf32>
    %c0_193 = arith.constant 0 : index
    %c273_194 = arith.constant 273 : index
    %180 = vector.load %arg14[%c0_193, %c273_194] : memref<8x444xf32, #tpu.memory_space<vmem>>, vector<8x171xf32>
    %181 = arith.maximumf %179, %180 : vector<8x171xf32>
    %182 = arith.maximumf %178, %181 : vector<8x171xf32>
    %c0_195 = arith.constant 0 : index
    %c0_196 = arith.constant 0 : index
    %183 = vector.load %arg9[%c0_195, %c0_196] : memref<171x36xf32, #tpu.memory_space<vmem>>, vector<171x36xf32>
    %cst_197 = arith.constant dense<0.000000e+00> : vector<8x36xf32>
    %184 = tpu.matmul %182, %183, %cst_197 {dimension_numbers = #tpu.dot_dimension_numbers<[1], [0], [0], [1], [0, 0, 1, 1], [], []>} : vector<8x171xf32>, vector<171x36xf32>, vector<8x36xf32> -> vector<8x36xf32>
    %c1_198 = arith.constant 1 : index
    %c0_199 = arith.constant 0 : index
    %c0_200 = arith.constant 0 : index
    %185 = vector.load %arg10[%c1_198, %c0_199, %c0_200] : memref<2x8x36xf32, #tpu.memory_space<vmem>>, vector<1x8x36xf32>
    %186 = vector.shape_cast %185 : vector<1x8x36xf32> to vector<8x36xf32>
    %187 = vector.shape_cast %184 : vector<8x36xf32> to vector<1x8x36xf32>
    tpu.vector_store %arg10[%c1_198, %c0_199, %c0_200], %187 {strides = array<i32>} : memref<2x8x36xf32, #tpu.memory_space<vmem>>, vector<1x8x36xf32>,
    return
  }
}

</mosaic_0001>

<bundles_post_ra>
// kernel: tpu_custom_call.1
= control target key start
LH: loop header
LB: loop body
LE: loop exit
PB: predicated region body
PF: predicated region fallthrough
CT: control target
= control target key end

     0   :  { %vm41_vm0 = vcmask 764928   ;;  %s1452_s17 = smov 126   ;;  %s1877_s0 = inlined_call_operand.vmem [shape: f32[2,4,256], index: 0, kind: input, shape index: {}]   ;;  %s1878_s1 = inlined_call_operand.vmem [shape: f32[8,36], index: 1, kind: input, shape index: {}]   ;;  %s1879_s2 = inlined_call_operand.vmem [shape: f32[8,1], index: 2, kind: input, shape index: {}]   ;;  %s1880_s3 = inlined_call_operand.vmem [shape: f32[8,1], index: 3, kind: input, shape index: {}]   ;;  %s1881_s4 = inlined_call_operand.vmem [shape: f32[1,478], index: 4, kind: input, shape index: {}]   ;;  %s1882_s5 = inlined_call_operand.vmem [shape: f32[8,72], index: 5, kind: input, shape index: {}]   ;;  %s1883_s6 = inlined_call_operand.vmem [shape: f32[8,1], index: 6, kind: input, shape index: {}]   ;;  %s1884_s7 = inlined_call_operand.vmem [shape: f32[8,1], index: 7, kind: input, shape index: {}]   ;;  %s1885_s8 = inlined_call_operand.vmem [shape: f32[1,444], index: 8, kind: input, shape index: {}]   ;;  %s1886_s9 = inlined_call_operand.vmem [shape: f32[171,36], index: 9, kind: input, shape index: {}]   ;;  %s1887_s10 = inlined_call_operand.hbm [shape: f32[2,8,36], index: 10, kind: output, shape index: {}]  }
   0x1   :  { %v57_v0 = vld [vmem:[%s1877_s0] sm:$0xff]  ;;  %v1257_v1 = vld [vmem:[%s1877_s0 + $0x8] sm:$0xff] }
   0x2   :  { %60 = vrot.lane.b32.xlu1 %v57_v0, %s1452_s17  ;;  %v59_v2 = vcombine.high %v57_v0, %v57_v0  ;;  %v45_v3 = vcombine.low %v57_v0, %v57_v0  ;;  %v169_v4 = vcombine.high %v1257_v1, %v1257_v1  ;;  %40 = vst [vmem:[#allocation2] sm:$0xf] %v57_v0  ;;  %153 = vst [vmem:[#allocation2 + $0x10] sm:$0xf] %v1257_v1 }
   0x3   :  { %15 = vsyncpa [#allocation7], 0  ;;  %s1453_s18 = smov 127   ;;  %s1454_s0 = smov 112   ;;  %v157_v5 = vcombine.low %v1257_v1, %v1257_v1  ;;  %v1459_v6 = vmov 0.0   ;;  %vm64_vm1 = vcmask 1031168  }
   0x4   :  { %46 = vrot.lane.b32.xlu0 %v45_v3, %s1453_s18  ;;  %42 = vst.msk [vmem:[#allocation2 + $0x8] sm:$0xf] %vm41_vm0, %v59_v2  ;;  %154 = vst.msk [vmem:[#allocation2 + $0x18] sm:$0xf] %vm41_vm0, %v169_v4  ;;  %s1455_s19 = smov 111   ;;  %s1456_s20 = smov 110   ;;  %353 = vmatprep.mubr.f32.mxu0 %v1459_v6 }
   0x5   :  { %s1457_s21 = smov 96   ;;  %s1458_s22 = smov 95   ;;  %424 = vmatprep.mubr.f32.mxu1 %v1459_v6  ;;  %vm50_vm2 = vcmask 1039360   ;;  %vm55_vm3 = vcmask 769028   ;;  %vm77_vm4 = vcmask 916480   ;;  %vm90_vm5 = vcmask 908288  }
   0x6   :  { %62 = vrot.lane.b32.xlu1 %v59_v2, %s1452_s17  ;;  %s1460_s23 = smov 94   ;;  %vm103_vm6 = vcmask 900096   ;;  %vm116_vm7 = vcmask 785408   ;;  %vm129_vm8 = vcmask 777216   ;;  %vm142_vm9 = vcmask 769024  }
   0x7   :  { %vm276_vm10 = vcmask 1043456   ;;  %vm272_vm11 = vcmask 293888  }
   0x8   :  { %48 = vrot.lane.b32.xlu0 %v57_v0, %s1453_s18 }
   0xa   :  { %75 = vrot.lane.b32.xlu1 %v57_v0, %s1454_s0 }
   0xc   :  { %73 = vrot.lane.b32.xlu0 %v45_v3, %s1454_s0 }
   0xe   :  { %160 = vrot.lane.b32.xlu1 %v1257_v1, %s1453_s18 }
  0x10   :  { %158 = vrot.lane.b32.xlu0 %v157_v5, %s1453_s18 }
  0x12   :  { %172 = vrot.lane.b32.xlu1 %v169_v4, %s1452_s17 }
  0x14   :  { %170 = vrot.lane.b32.xlu0 %v1257_v1, %s1452_s17 }
  0x16   :  { %184 = vrot.lane.b32.xlu1 %v1257_v1, %s1454_s0 }
  0x18   :  { %182 = vrot.lane.b32.xlu0 %v157_v5, %s1454_s0 }
  0x1a   :  { %88 = vrot.lane.b32.xlu1 %v59_v2, %s1455_s19 }
  0x1c   :  { %86 = vrot.lane.b32.xlu0 %v57_v0, %s1455_s19 }
  0x1e   :  { %101 = vrot.lane.b32.xlu1 %v57_v0, %s1456_s20 }
  0x20   :  { %99 = vrot.lane.b32.xlu0 %v45_v3, %s1456_s20 }
  0x22   :  { %114 = vrot.lane.b32.xlu1 %v59_v2, %s1457_s21 }
  0x24   :  { %112 = vrot.lane.b32.xlu0 %v57_v0, %s1457_s21 }
  0x26   :  { %127 = vrot.lane.b32.xlu1 %v57_v0, %s1458_s22 }
  0x28   :  { %125 = vrot.lane.b32.xlu0 %v45_v3, %s1458_s22 }
  0x2a   :  { %196 = vrot.lane.b32.xlu1 %v169_v4, %s1455_s19 }
  0x2c   :  { %194 = vrot.lane.b32.xlu0 %v1257_v1, %s1455_s19 }
  0x2e   :  { %208 = vrot.lane.b32.xlu1 %v1257_v1, %s1456_s20 }
  0x30   :  { %206 = vrot.lane.b32.xlu0 %v157_v5, %s1456_s20 }
  0x32   :  { %220 = vrot.lane.b32.xlu1 %v169_v4, %s1457_s21 }
  0x34   :  { %218 = vrot.lane.b32.xlu0 %v1257_v1, %s1457_s21 }
  0x36   :  { %232 = vrot.lane.b32.xlu1 %v1257_v1, %s1458_s22 }
  0x38   :  { %230 = vrot.lane.b32.xlu0 %v157_v5, %s1458_s22 }
  0x3a   :  { %140 = vrot.lane.b32.xlu1 %v59_v2, %s1460_s23 }
  0x3c   :  { %138 = vrot.lane.b32.xlu0 %v57_v0, %s1460_s23 }
  0x3e   :  { %244 = vrot.lane.b32.xlu1 %v169_v4, %s1460_s23 }
  0x40   :  { %242 = vrot.lane.b32.xlu0 %v1257_v1, %s1460_s23 }
  0x74   :  { %v61_v7 = vpop.permute.xlu1 %60 }
  0x76   :  { %v47_v8 = vpop.permute.xlu0 %46 }
  0x78   :  { %v63_v9 = vpop.permute.xlu1 %62 }
  0x79   :  { %v65_v10 = vsel %vm64_vm1, %v61_v7, %v63_v9  ;;  %69 = vst.msk [vmem:[#allocation2 + $0x28] sm:$0xf] %vm41_vm0, %v63_v9 }
  0x7a   :  { %68 = vst [vmem:[#allocation2 + $0x20] sm:$0xf] %v65_v10  ;;  %v49_v11 = vpop.permute.xlu0 %48 }
  0x7b   :  { %v51_v12 = vsel %vm50_vm2, %v47_v8, %v49_v11  ;;  %56 = vst.msk [vmem:[#allocation2 + $0x8] sm:$0xf0] %vm55_vm3, %v49_v11 }
  0x7c   :  { %54 = vst [vmem:[#allocation2] sm:$0xf0] %v51_v12  ;;  %v76_v13 = vpop.permute.xlu1 %75 }
  0x7d   :  { %82 = vst.msk [vmem:[#allocation2 + $0x28] sm:$0xf0] %vm55_vm3, %v76_v13 }
  0x7e   :  { %v74_v14 = vpop.permute.xlu0 %73 }
  0x7f   :  { %v78_v15 = vsel %vm77_vm4, %v74_v14, %v76_v13 }
  0x80   :  { %81 = vst [vmem:[#allocation2 + $0x20] sm:$0xf0] %v78_v15  ;;  %v161_v16 = vpop.permute.xlu1 %160 }
  0x81   :  { %166 = vst.msk [vmem:[#allocation2 + $0x18] sm:$0xf0] %vm55_vm3, %v161_v16 }
  0x82   :  { %v159_v17 = vpop.permute.xlu0 %158  ;;  %v253_v20 = vld [vmem:[#allocation2 + $0x8] sm:$0xff] }
  0x83   :  { %v162_v18 = vsel %vm50_vm2, %v159_v17, %v161_v16  ;;  %v252_v25 = vld [vmem:[#allocation2] sm:$0xff] }
  0x84   :  { %165 = vst [vmem:[#allocation2 + $0x10] sm:$0xf0] %v162_v18  ;;  %v173_v19 = vpop.permute.xlu1 %172  ;;  %v257_v21 = vld [vmem:[#allocation2 + $0x28] sm:$0xff]  ;;  %v251_v17 = vld [vmem:[%s1878_s1] sm:$0xff] }
  0x85   :  { %178 = vst.msk [vmem:[#allocation2 + $0x38] sm:$0xf] %vm41_vm0, %v173_v19  ;;  %v1277_v22 = vpack.c.bf16 %v257_v21, %v253_v20  ;;  %v1461_v21 = vmov 0  }
  0x86   :  { %v171_v23 = vpop.permute.xlu0 %170  ;;  %1408 = vset.pattern.permute.xlu0 %v1461_v21  ;;  %1409 = vset.pattern.permute.xlu1 %v1461_v21 }
  0x87   :  { %v174_v24 = vsel %vm64_vm1, %v171_v23, %v173_v19  ;;  %1278 = vmatprep.subr.bf16.mxu0 %v1277_v22  ;;  %v256_v26 = vld [vmem:[#allocation2 + $0x20] sm:$0xff]  ;;  %v434_v22 = vlaneseq }
  0x88   :  { %177 = vst [vmem:[#allocation2 + $0x30] sm:$0xf] %v174_v24  ;;  %v185_v27 = vpop.permute.xlu1 %184  ;;  %v1279_v28 = vpack.c.bf16 %v256_v26, %v252_v25  ;;  %v255_v35 = vld [vmem:[#allocation2 + $0x18] sm:$0xff]  ;;  %v431_v23 = vld [vmem:[%s1881_s4] sm:$0xf] }
  0x89   :  { %190 = vst.msk [vmem:[#allocation2 + $0x38] sm:$0xf0] %vm55_vm3, %v185_v27  ;;  %v1612_v24 = vshrl.u32 %v434_v22, 7  ;;  %vm432_vm12 = vcmp.gt.f32.partialorder %v431_v23, 0.5 }
  0x8a   :  { %v183_v29 = vpop.permute.xlu0 %182  ;;  %1280 = vmatpush1.bf16.msra.mxu0 %v1279_v28  ;;  %v433_v26 = vsel %vm432_vm12, 1, %v1461_v21  ;;  %vm1463_vm12 = vmmov 1  }
  0x8b   :  { %v186_v30 = vsel %vm77_vm4, %v183_v29, %v185_v27  ;;  %v254_v40 = vld [vmem:[#allocation2 + $0x10] sm:$0xff]  ;;  %v436_v25 = vsub.s32 0, %v1612_v24  ;;  %v440_v27 = vsub.s32 1, %v1612_v24  ;;  %v444_v28 = vsub.s32 2, %v1612_v24 }
  0x8c   :  { %189 = vst [vmem:[#allocation2 + $0x30] sm:$0xf0] %v186_v30  ;;  %v89_v31 = vpop.permute.xlu1 %88  ;;  %v448_v30 = vsub.s32 3, %v1612_v24 }
  0x8d   :  { %95 = vst.msk [vmem:[#allocation2 + $0x48] sm:$0xf] %vm41_vm0, %v89_v31  ;;  %v441_v29 = vrot.slane %v433_v26, %v440_v27 }
  0x8e   :  { %v87_v32 = vpop.permute.xlu0 %86 }
  0x8f   :  { %v91_v33 = vsel %vm90_vm5, %v87_v32, %v89_v31  ;;  %v445_v31 = vrot.slane %v433_v26, %v444_v28  ;;  %vm451_vm14 = vcmp.eq.s32.totalorder %v441_v29, 1  ;;  %v449_v32 = vrot.slane %v433_v26, %v448_v30 }
  0x90   :  { %94 = vst [vmem:[#allocation2 + $0x40] sm:$0xf] %v91_v33  ;;  %v102_v34 = vpop.permute.xlu1 %101  ;;  %v259_v36 = vld [vmem:[#allocation2 + $0x38] sm:$0xff] }
  0x91   :  { %108 = vst.msk [vmem:[#allocation2 + $0x48] sm:$0xf0] %vm55_vm3, %v102_v34  ;;  %v1285_v37 = vpack.c.bf16 %v259_v36, %v255_v35  ;;  %vm452_vm15 = vcmp.eq.s32.totalorder %v445_v31, 1 }
  0x92   :  { %v100_v38 = vpop.permute.xlu0 %99 }
  0x93   :  { %v104_v39 = vsel %vm103_vm6, %v100_v38, %v102_v34  ;;  %1286 = vmatprep.subr.bf16.mxu1 %v1285_v37  ;;  %v258_v41 = vld [vmem:[#allocation2 + $0x30] sm:$0xff] }
  0x94   :  { %107 = vst [vmem:[#allocation2 + $0x40] sm:$0xf0] %v104_v39  ;;  %v115_v42 = vpop.permute.xlu1 %114  ;;  %v1287_v43 = vpack.c.bf16 %v258_v41, %v254_v40 }
  0x95   :  { %121 = vst.msk [vmem:[#allocation2 + $0x68] sm:$0xf] %vm41_vm0, %v115_v42 }
  0x96   :  { %v113_v44 = vpop.permute.xlu0 %112  ;;  %1288 = vmatpush1.bf16.msra.mxu1 %v1287_v43 }
  0x97   :  { %v117_v45 = vsel %vm116_vm7, %v113_v44, %v115_v42 }
  0x98   :  { %120 = vst [vmem:[#allocation2 + $0x60] sm:$0xf] %v117_v45  ;;  %v128_v46 = vpop.permute.xlu1 %127  ;;  %v261_v53 = vld [vmem:[#allocation2 + $0x48] sm:$0xff] }
  0x99   :  { %134 = vst.msk [vmem:[#allocation2 + $0x68] sm:$0xf0] %vm55_vm3, %v128_v46 }
  0x9a   :  { %v126_v47 = vpop.permute.xlu0 %125 }
  0x9b   :  { %v130_v48 = vsel %vm129_vm8, %v126_v47, %v128_v46  ;;  %v260_v58 = vld [vmem:[#allocation2 + $0x40] sm:$0xff] }
  0x9c   :  { %133 = vst [vmem:[#allocation2 + $0x60] sm:$0xf0] %v130_v48  ;;  %v197_v49 = vpop.permute.xlu1 %196 }
  0x9d   :  { %202 = vst.msk [vmem:[#allocation2 + $0x58] sm:$0xf] %vm41_vm0, %v197_v49 }
  0x9e   :  { %v195_v50 = vpop.permute.xlu0 %194 }
  0x9f   :  { %v198_v51 = vsel %vm90_vm5, %v195_v50, %v197_v49 }
  0xa0   :  { %201 = vst [vmem:[#allocation2 + $0x50] sm:$0xf] %v198_v51  ;;  %v209_v52 = vpop.permute.xlu1 %208  ;;  %v265_v54 = vld [vmem:[#allocation2 + $0x68] sm:$0xff] }
  0xa1   :  { %214 = vst.msk [vmem:[#allocation2 + $0x58] sm:$0xf0] %vm55_vm3, %v209_v52  ;;  %v1281_v55 = vpack.c.bf16 %v265_v54, %v261_v53 }
  0xa2   :  { %v207_v56 = vpop.permute.xlu0 %206 }
  0xa3   :  { %v210_v57 = vsel %vm103_vm6, %v207_v56, %v209_v52  ;;  %1282 = vmatprep.subr.bf16.mxu0 %v1281_v55  ;;  %v264_v59 = vld [vmem:[#allocation2 + $0x60] sm:$0xff] }
  0xa4   :  { %213 = vst [vmem:[#allocation2 + $0x50] sm:$0xf0] %v210_v57  ;;  %v221_v60 = vpop.permute.xlu1 %220  ;;  %v1283_v61 = vpack.c.bf16 %v264_v59, %v260_v58 }
  0xa5   :  { %226 = vst.msk [vmem:[#allocation2 + $0x78] sm:$0xf] %vm41_vm0, %v221_v60 }
  0xa6   :  { %v219_v62 = vpop.permute.xlu0 %218  ;;  %1284 = vmatpush1.bf16.msra.mxu0 %v1283_v61 }
  0xa7   :  { %v222_v63 = vsel %vm116_vm7, %v219_v62, %v221_v60  ;;  %v478_v60 = vld [vmem:[%s1879_s2] sm:$0xff] }
  0xa8   :  { %225 = vst [vmem:[#allocation2 + $0x70] sm:$0xf] %v222_v63  ;;  %v233_v0 = vpop.permute.xlu1 %232  ;;  %v263_v8 = vld [vmem:[#allocation2 + $0x58] sm:$0xff]  ;;  %v482_v63 = vld [vmem:[%s1880_s3] sm:$0xff] }
  0xa9   :  { %238 = vst.msk [vmem:[#allocation2 + $0x78] sm:$0xf0] %vm55_vm3, %v233_v0  ;;  %vm514_vm3 = vcmask 490496  }
  0xaa   :  { %v231_v1 = vpop.permute.xlu0 %230 }
  0xab   :  { %v234_v2 = vsel %vm129_vm8, %v231_v1, %v233_v0  ;;  %v262_v13 = vld [vmem:[#allocation2 + $0x50] sm:$0xff] }
  0xac   :  { %237 = vst [vmem:[#allocation2 + $0x70] sm:$0xf0] %v234_v2  ;;  %v141_v3 = vpop.permute.xlu1 %140 }
  0xad   :  { %147 = vst.msk [vmem:[#allocation2 + $0x88] sm:$0xf] %vm41_vm0, %v141_v3 }
  0xae   :  { %v139_v4 = vpop.permute.xlu0 %138 }
  0xaf   :  { %v143_v5 = vsel %vm142_vm9, %v139_v4, %v141_v3 }
  0xb0   :  { %146 = vst [vmem:[#allocation2 + $0x80] sm:$0xf] %v143_v5  ;;  %v245_v7 = vpop.permute.xlu1 %244  ;;  %v267_v9 = vld [vmem:[#allocation2 + $0x78] sm:$0xff] }
  0xb1   :  { %250 = vst.msk [vmem:[#allocation2 + $0x98] sm:$0xf] %vm41_vm0, %v245_v7  ;;  %v1289_v10 = vpack.c.bf16 %v267_v9, %v263_v8  ;;  %vm453_vm0 = vcmp.eq.s32.totalorder %v449_v32, 1 }
  0xb2   :  { %v243_v11 = vpop.permute.xlu0 %242 }
  0xb3   :  { %v246_v12 = vsel %vm142_vm9, %v243_v11, %v245_v7  ;;  %1290 = vmatprep.subr.bf16.mxu1 %v1289_v10  ;;  %v266_v14 = vld [vmem:[#allocation2 + $0x70] sm:$0xff] }
  0xb4   :  { %249 = vst [vmem:[#allocation2 + $0x90] sm:$0xf] %v246_v12  ;;  %v1291_v15 = vpack.c.bf16 %v266_v14, %v262_v13  ;;  %v269_v16 = vld [vmem:[#allocation2 + $0x88] sm:$0xf] }
  0xb5   :  { %1265 = vmatprep.subr.msk.mxu0 %vm276_vm10, %v269_v16 }
  0xb6   :  { %1292 = vmatpush1.bf16.msra.mxu1 %v1291_v15 }
  0xb7   :  { %v268_v18 = vld [vmem:[#allocation2 + $0x80] sm:$0xf] }
  0xb8   :  { %1266 = vmatpush1.msk.msra.mxu0 %vm276_vm10, %v268_v18  ;;  %v271_v19 = vld [vmem:[#allocation2 + $0x98] sm:$0xf] }
  0xb9   :  { %1267 = vmatmul.mubr.msk.f32.vlgmr.msra.gmra.mrb[0].mxu0 %vm272_vm11, %v251_v17  ;;  %1268 = vmatprep.subr.msk.mxu1 %vm276_vm10, %v271_v19 }
  0xba   :  { %833 = vmatprep.mubr.f32.mxu0 %v1459_v6 }
  0xbb   :  { %v270_v20 = vld [vmem:[#allocation2 + $0x90] sm:$0xf] }
  0xbc   :  { %1269 = vmatpush1.msk.msra.mxu1 %vm276_vm10, %v270_v20  ;;  %vm1041_vm10 = vcmask 1042432  }
  0xbd   :  { %1270 = vmatmul.mubr.msk.f32.vlgmr.msra.gmra.mrb[0].mxu1 %vm272_vm11, %v251_v17 }
  0xbe   :  { %904 = vmatprep.mubr.f32.mxu1 %v1459_v6  ;;  %v437_v6 = vrot.slane %v433_v26, %v436_v25 }
  0xc0   :  { %vm450_vm13 = vcmp.eq.s32.totalorder %v437_v6, 1 }
 0x18c   :  { %v355_v33 = vpop.f32.mrb[0].mxu0 }
 0x18d   :  { %v454_v34 = vsel %vm450_vm13, %v355_v33, 0.0  ;;  %v357_v35 = vpop.f32.mrb[1].mxu0  ;;  %vm1357_vm13 = vmpackc.low %vm1041_vm10, %vm1463_vm12 }
 0x18e   :  { %v458_v36 = vmul.f32 %v454_v34, %v454_v34  ;;  %v455_v37 = vsel %vm451_vm14, %v357_v35, 0.0  ;;  %vm1037_vm14 = vcmask 351232  }
 0x18f   :  { %v459_v38 = vmul.f32 %v455_v37, %v455_v37  ;;  %v462_v39 = vadd.f32 %v455_v37, %v454_v34 }
 0x190   :  { %v426_v40 = vpop.f32.mrb[0].mxu1 }
 0x191   :  { %v468_v41 = vadd.f32 %v459_v38, %v458_v36  ;;  %v456_v42 = vsel %vm452_vm15, %v426_v40, 0.0  ;;  %v428_v43 = vpop.f32.mrb[1].mxu1 }
 0x192   :  { %v460_v44 = vmul.f32 %v456_v42, %v456_v42  ;;  %v463_v45 = vadd.f32 %v462_v39, %v456_v42  ;;  %v457_v46 = vsel %vm453_vm0, %v428_v43, 0.0 }
 0x193   :  { %v461_v47 = vmul.f32 %v457_v46, %v457_v46  ;;  %v464_v48 = vsel %vm142_vm9, %v457_v46, 0.0 }
 0x194   :  { %v465_v49 = vadd.f32 %v464_v48, %v463_v45  ;;  %v469_v50 = vadd.f32 %v468_v41, %v460_v44 }
 0x195   :  { %v470_v51 = vsel %vm142_vm9, %v461_v47, 0.0 }
 0x196   :  { %466 = vadd.xlane.f32.xlu0 %v465_v49  ;;  %v471_v52 = vadd.f32 %v470_v51, %v469_v50 }
 0x198   :  { %472 = vadd.xlane.f32.xlu1 %v471_v52 }
 0x223   :  { %v467_v53 = vpop.xlane.xlu0 %466 }
 0x224   :  { %v474_v54 = vmul.f32 0.0025510204, %v467_v53 }
 0x225   :  { %v473_v55 = vpop.xlane.xlu1 %472 }
 0x226   :  { %v476_v56 = vmul.f32 %v474_v54, %v474_v54  ;;  %v475_v57 = vmul.f32 0.0025510204, %v473_v55 }
 0x228   :  { %v477_v58 = vsub.f32 %v475_v57, %v476_v56 }
 0x22a   :  { %v479_v59 = vadd.f32 1e-05, %v477_v58 }
 0x22c   :  { %1424 = vrsqrt.f32 %v479_v59 }
 0x236   :  { %v1425_v61 = vpop.eup %1424 }
 0x237   :  { %v481_v62 = vmul.f32 %v1425_v61, %v478_v60 }
 0x239   :  { %487 = vperm.xlu0 %1408, %v481_v62   ;;  %v483_v0 = vmul.f32 %v481_v62, %v474_v54 }
 0x23b   :  { %v484_v1 = vsub.f32 %v482_v63, %v483_v0 }
 0x23d   :  { %496 = vperm.xlu1 %1409, %v484_v1  }
 0x2b8   :  { %v488_v2 = vpop.permute.xlu0 %487 }
 0x2b9   :  { %v490_v3 = vmul.f32 %v488_v2, %v355_v33  ;;  %v491_v4 = vmul.f32 %v488_v2, %v357_v35  ;;  %v492_v5 = vmul.f32 %v488_v2, %v426_v40  ;;  %v493_v7 = vmul.f32 %v488_v2, %v428_v43 }
 0x2bc   :  { %v497_v8 = vpop.permute.xlu1 %496 }
 0x2bd   :  { %v499_v9 = vadd.f32 %v497_v8, %v490_v3  ;;  %v500_v10 = vadd.f32 %v497_v8, %v491_v4  ;;  %v501_v11 = vadd.f32 %v497_v8, %v492_v5  ;;  %v502_v12 = vadd.f32 %v497_v8, %v493_v7 }
 0x2bf   :  { %v503_v13 = vmax.f32 %v499_v9, 0.0  ;;  %v504_v14 = vmax.f32 %v500_v10, 0.0  ;;  %v1635_v15 = vmax.f32 %v501_v11, 0.0  ;;  %v506_v16 = vmax.f32 %v502_v12, 0.0 }
 0x2c1   :  { %510 = vst.msk [vmem:[#allocation3 + $0x18] sm:$0xff] %vm142_vm9, %v506_v16  ;;  %546 = vrot.lane.b32.xlu0 %v503_v13, %s1454_s0  ;;  %520 = vrot.lane.b32.xlu1 %v503_v13, %s1453_s18 }
 0x2c2   :  { %515 = vst.msk [vmem:[#allocation4 + $0x8] sm:$0xff] %vm514_vm3, %v504_v14 }
 0x2c5   :  { %641 = vrot.lane.b32.xlu0 %v1635_v15, %s1452_s17  ;;  %522 = vrot.lane.b32.xlu1 %v504_v14, %s1453_s18 }
 0x2c8   :  { %v625_v17 = vld [vmem:[#allocation3 + $0x18] sm:$0xff] }
 0x2c9   :  { %654 = vrot.lane.b32.xlu0 %v1635_v15, %s1454_s0  ;;  %628 = vrot.lane.b32.xlu1 %v1635_v15, %s1453_s18  ;;  %623 = vst.msk [vmem:[#allocation4 + $0x18] sm:$0xff] %vm514_vm3, %v625_v17  ;;  %v730_v31 = vld [vmem:[#allocation4 + $0x8] sm:$0xff] }
 0x2cd   :  { %559 = vrot.lane.b32.xlu0 %v503_v13, %s1455_s19  ;;  %630 = vrot.lane.b32.xlu1 %v625_v17, %s1453_s18 }
 0x2d0   :  { %v732_v39 = vld [vmem:[#allocation4 + $0x18] sm:$0xff] }
 0x2d1   :  { %572 = vrot.lane.b32.xlu0 %v503_v13, %s1456_s20  ;;  %533 = vrot.lane.b32.xlu1 %v503_v13, %s1452_s17 }
 0x2d5   :  { %667 = vrot.lane.b32.xlu0 %v1635_v15, %s1455_s19  ;;  %535 = vrot.lane.b32.xlu1 %v504_v14, %s1452_s17 }
 0x2d9   :  { %680 = vrot.lane.b32.xlu0 %v1635_v15, %s1456_s20  ;;  %548 = vrot.lane.b32.xlu1 %v504_v14, %s1454_s0 }
 0x2dd   :  { %585 = vrot.lane.b32.xlu0 %v503_v13, %s1457_s21  ;;  %643 = vrot.lane.b32.xlu1 %v625_v17, %s1452_s17 }
 0x2e1   :  { %598 = vrot.lane.b32.xlu0 %v503_v13, %s1458_s22  ;;  %656 = vrot.lane.b32.xlu1 %v625_v17, %s1454_s0 }
 0x2e5   :  { %693 = vrot.lane.b32.xlu0 %v1635_v15, %s1457_s21  ;;  %561 = vrot.lane.b32.xlu1 %v504_v14, %s1455_s19 }
 0x2e9   :  { %706 = vrot.lane.b32.xlu0 %v1635_v15, %s1458_s22  ;;  %574 = vrot.lane.b32.xlu1 %v504_v14, %s1456_s20 }
 0x2ed   :  { %611 = vrot.lane.b32.xlu0 %v503_v13, %s1460_s23  ;;  %669 = vrot.lane.b32.xlu1 %v625_v17, %s1455_s19 }
 0x2f1   :  { %719 = vrot.lane.b32.xlu0 %v1635_v15, %s1460_s23  ;;  %682 = vrot.lane.b32.xlu1 %v625_v17, %s1456_s20 }
 0x2f5   :  { %587 = vrot.lane.b32.xlu1 %v504_v14, %s1457_s21 }
 0x2f9   :  { %600 = vrot.lane.b32.xlu1 %v504_v14, %s1458_s22 }
 0x2fd   :  { %695 = vrot.lane.b32.xlu1 %v625_v17, %s1457_s21 }
 0x301   :  { %708 = vrot.lane.b32.xlu1 %v625_v17, %s1458_s22 }
 0x305   :  { %613 = vrot.lane.b32.xlu1 %v504_v14, %s1460_s23 }
 0x309   :  { %721 = vrot.lane.b32.xlu1 %v625_v17, %s1460_s23 }
 0x333   :  { %v547_v18 = vpop.permute.xlu0 %546  ;;  %v521_v19 = vpop.permute.xlu1 %520 }
 0x337   :  { %v523_v20 = vpop.permute.xlu1 %522  ;;  %v642_v23 = vpop.permute.xlu0 %641 }
 0x338   :  { %v524_v22 = vsel %vm50_vm2, %v521_v19, %v523_v20  ;;  %528 = vst.msk [vmem:[#allocation4 + $0x28] sm:$0xff] %vm514_vm3, %v523_v20 }
 0x339   :  { %v1295_v35 = vpack.c.bf16 %v524_v22, %v503_v13 }
 0x33b   :  { %v629_v26 = vpop.permute.xlu1 %628  ;;  %v655_v6 = vpop.permute.xlu0 %654 }
 0x33f   :  { %v631_v29 = vpop.permute.xlu1 %630  ;;  %v734_v32 = vld [vmem:[#allocation4 + $0x28] sm:$0xff]  ;;  %v560_v37 = vpop.permute.xlu0 %559 }
 0x340   :  { %v632_v33 = vsel %vm50_vm2, %v629_v26, %v631_v29  ;;  %636 = vst.msk [vmem:[#allocation4 + $0x38] sm:$0xff] %vm514_vm3, %v631_v29  ;;  %v1293_v34 = vpack.c.bf16 %v734_v32, %v730_v31 }
 0x341   :  { %v1311_v43 = vpack.c.bf16 %v632_v33, %v1635_v15 }
 0x342   :  { %1294 = vmatprep.subr.bf16.mxu0 %v1293_v34 }
 0x343   :  { %v534_v36 = vpop.permute.xlu1 %533  ;;  %1296 = vmatpush1.bf16.msra.mxu0 %v1295_v35  ;;  %v573_v44 = vpop.permute.xlu0 %572 }
 0x347   :  { %v536_v38 = vpop.permute.xlu1 %535  ;;  %v736_v40 = vld [vmem:[#allocation4 + $0x38] sm:$0xff]  ;;  %v668_v49 = vpop.permute.xlu0 %667 }
 0x348   :  { %v537_v41 = vsel %vm64_vm1, %v534_v36, %v536_v38  ;;  %541 = vst.msk [vmem:[#allocation4 + $0x48] sm:$0xff] %vm514_vm3, %v536_v38  ;;  %v1309_v42 = vpack.c.bf16 %v736_v40, %v732_v39 }
 0x34a   :  { %1310 = vmatprep.subr.bf16.mxu1 %v1309_v42 }
 0x34b   :  { %1312 = vmatpush1.bf16.msra.mxu1 %v1311_v43  ;;  %v549_v45 = vpop.permute.xlu1 %548  ;;  %v681_v56 = vpop.permute.xlu0 %680 }
 0x34c   :  { %v550_v46 = vsel %vm77_vm4, %v547_v18, %v549_v45  ;;  %554 = vst.msk [vmem:[#allocation4 + $0x68] sm:$0xff] %vm514_vm3, %v549_v45 }
 0x34d   :  { %v1299_v55 = vpack.c.bf16 %v550_v46, %v537_v41  ;;  %v728_v46 = vld [vmem:[%s1882_s5] sm:$0xff] }
 0x34f   :  { %v644_v47 = vpop.permute.xlu1 %643  ;;  %v738_v51 = vld [vmem:[#allocation4 + $0x48] sm:$0xff]  ;;  %v586_v0 = vpop.permute.xlu0 %585 }
 0x350   :  { %v645_v48 = vsel %vm64_vm1, %v642_v23, %v644_v47  ;;  %649 = vst.msk [vmem:[#allocation4 + $0x58] sm:$0xff] %vm514_vm3, %v644_v47  ;;  %vm765_vm1 = vcmask 588800  }
 0x353   :  { %v657_v50 = vpop.permute.xlu1 %656  ;;  %v742_v52 = vld [vmem:[#allocation4 + $0x68] sm:$0xff]  ;;  %v599_v4 = vpop.permute.xlu0 %598 }
 0x354   :  { %v658_v53 = vsel %vm77_vm4, %v655_v6, %v657_v50  ;;  %662 = vst.msk [vmem:[#allocation4 + $0x78] sm:$0xff] %vm514_vm3, %v657_v50  ;;  %v1297_v54 = vpack.c.bf16 %v742_v52, %v738_v51 }
 0x355   :  { %v1315_v1 = vpack.c.bf16 %v658_v53, %v645_v48  ;;  %v911_v48 = vld [vmem:[%s1885_s8] sm:$0xf] }
 0x356   :  { %1298 = vmatprep.subr.bf16.mxu0 %v1297_v54 }
 0x357   :  { %v562_v57 = vpop.permute.xlu1 %561  ;;  %1300 = vmatpush1.bf16.msra.mxu0 %v1299_v55  ;;  %v740_v60 = vld [vmem:[#allocation4 + $0x58] sm:$0xff]  ;;  %v694_v14 = vpop.permute.xlu0 %693 }
 0x358   :  { %v563_v58 = vsel %vm90_vm5, %v560_v37, %v562_v57  ;;  %567 = vst.msk [vmem:[#allocation4 + $0x88] sm:$0xff] %vm514_vm3, %v562_v57 }
 0x35b   :  { %v575_v59 = vpop.permute.xlu1 %574  ;;  %v744_v61 = vld [vmem:[#allocation4 + $0x78] sm:$0xff]  ;;  %v707_v22 = vpop.permute.xlu0 %706 }
 0x35c   :  { %v576_v62 = vsel %vm103_vm6, %v573_v44, %v575_v59  ;;  %580 = vst.msk [vmem:[#allocation4 + $0xa8] sm:$0xff] %vm514_vm3, %v575_v59  ;;  %v1313_v63 = vpack.c.bf16 %v744_v61, %v740_v60 }
 0x35d   :  { %v1303_v11 = vpack.c.bf16 %v576_v62, %v563_v58 }
 0x35e   :  { %1314 = vmatprep.subr.bf16.mxu1 %v1313_v63 }
 0x35f   :  { %1316 = vmatpush1.bf16.msra.mxu1 %v1315_v1  ;;  %v670_v2 = vpop.permute.xlu1 %669  ;;  %v746_v7 = vld [vmem:[#allocation4 + $0x88] sm:$0xff]  ;;  %v612_v34 = vpop.permute.xlu0 %611 }
 0x360   :  { %v671_v3 = vsel %vm90_vm5, %v668_v49, %v670_v2  ;;  %675 = vst.msk [vmem:[#allocation4 + $0x98] sm:$0xff] %vm514_vm3, %v670_v2  ;;  %vm912_vm5 = vcmp.gt.f32.partialorder %v911_v48, 0.5 }
 0x361   :  { %v913_v49 = vsel %vm912_vm5, 1, %v1461_v21 }
 0x362   :  { %v917_v50 = vrot.slane %v913_v49, %v436_v25  ;;  %v921_v51 = vrot.slane %v913_v49, %v440_v27  ;;  %v925_v52 = vrot.slane %v913_v49, %v444_v28  ;;  %v929_v53 = vrot.slane %v913_v49, %v448_v30  ;;  %v1021_v49 = vld [vmem:[%s1886_s9 + $0x30] sm:$0xff] }
 0x363   :  { %v683_v5 = vpop.permute.xlu1 %682  ;;  %v750_v8 = vld [vmem:[#allocation4 + $0xa8] sm:$0xff]  ;;  %v720_v38 = vpop.permute.xlu0 %719 }
 0x364   :  { %v684_v9 = vsel %vm103_vm6, %v681_v56, %v683_v5  ;;  %688 = vst.msk [vmem:[#allocation4 + $0xb8] sm:$0xff] %vm514_vm3, %v683_v5  ;;  %v1301_v10 = vpack.c.bf16 %v750_v8, %v746_v7  ;;  %vm930_vm6 = vcmp.eq.s32.totalorder %v917_v50, 1  ;;  %v1022_v50 = vld [vmem:[%s1886_s9 + $0x38] sm:$0xff] }
 0x365   :  { %v1319_v20 = vpack.c.bf16 %v684_v9, %v671_v3 }
 0x366   :  { %1302 = vmatprep.subr.bf16.mxu0 %v1301_v10 }
 0x367   :  { %v588_v12 = vpop.permute.xlu1 %587  ;;  %1304 = vmatpush1.bf16.msra.mxu0 %v1303_v11  ;;  %v748_v16 = vld [vmem:[#allocation4 + $0x98] sm:$0xff] }
 0x368   :  { %v589_v13 = vsel %vm116_vm7, %v586_v0, %v588_v12  ;;  %593 = vst.msk [vmem:[#allocation4 + $0xc8] sm:$0xff] %vm514_vm3, %v588_v12  ;;  %v958_v12 = vld [vmem:[%s1883_s6] sm:$0xff] }
 0x36b   :  { %v601_v15 = vpop.permute.xlu1 %600  ;;  %v752_v17 = vld [vmem:[#allocation4 + $0xb8] sm:$0xff] }
 0x36c   :  { %v602_v18 = vsel %vm129_vm8, %v599_v4, %v601_v15  ;;  %606 = vst.msk [vmem:[#allocation4 + $0xe8] sm:$0xff] %vm514_vm3, %v601_v15  ;;  %v1317_v19 = vpack.c.bf16 %v752_v17, %v748_v16  ;;  %v962_v15 = vld [vmem:[%s1884_s7] sm:$0xff] }
 0x36d   :  { %v1307_v35 = vpack.c.bf16 %v602_v18, %v589_v13 }
 0x36e   :  { %1318 = vmatprep.subr.bf16.mxu1 %v1317_v19 }
 0x36f   :  { %1320 = vmatpush1.bf16.msra.mxu1 %v1319_v20  ;;  %v696_v23 = vpop.permute.xlu1 %695  ;;  %v754_v29 = vld [vmem:[#allocation4 + $0xc8] sm:$0xff] }
 0x370   :  { %v697_v26 = vsel %vm116_vm7, %v694_v14, %v696_v23  ;;  %701 = vst.msk [vmem:[#allocation4 + $0xd8] sm:$0xff] %vm514_vm3, %v696_v23  ;;  %vm931_vm7 = vcmp.eq.s32.totalorder %v921_v51, 1  ;;  %v1335_v51 = vpack.c.bf16 %v1022_v50, %v1021_v49 }
 0x373   :  { %v709_v6 = vpop.permute.xlu1 %708  ;;  %v758_v31 = vld [vmem:[#allocation4 + $0xe8] sm:$0xff] }
 0x374   :  { %v710_v32 = vsel %vm129_vm8, %v707_v22, %v709_v6  ;;  %714 = vst.msk [vmem:[#allocation4 + $0xf8] sm:$0xff] %vm514_vm3, %v709_v6  ;;  %v1305_v33 = vpack.c.bf16 %v758_v31, %v754_v29  ;;  %vm932_vm8 = vcmp.eq.s32.totalorder %v925_v52, 1  ;;  %v1023_v52 = vld [vmem:[%s1886_s9 + $0x40] sm:$0xff] }
 0x375   :  { %v1323_v44 = vpack.c.bf16 %v710_v32, %v697_v26 }
 0x376   :  { %1306 = vmatprep.subr.bf16.mxu0 %v1305_v33 }
 0x377   :  { %v614_v36 = vpop.permute.xlu1 %613  ;;  %1308 = vmatpush1.bf16.msra.mxu0 %v1307_v35  ;;  %v756_v40 = vld [vmem:[#allocation4 + $0xd8] sm:$0xff] }
 0x378   :  { %v615_v37 = vsel %vm142_vm9, %v612_v34, %v614_v36  ;;  %619 = vst.msk [vmem:[#allocation4 + $0x108] sm:$0xff] %vm514_vm3, %v614_v36 }
 0x37b   :  { %v722_v39 = vpop.permute.xlu1 %721  ;;  %v760_v41 = vld [vmem:[#allocation4 + $0xf8] sm:$0xff] }
 0x37c   :  { %v723_v42 = vsel %vm142_vm9, %v720_v38, %v722_v39  ;;  %727 = vst.msk [vmem:[#allocation4 + $0x118] sm:$0xff] %vm514_vm3, %v722_v39  ;;  %v1321_v43 = vpack.c.bf16 %v760_v41, %v756_v40  ;;  %vm933_vm9 = vcmp.eq.s32.totalorder %v929_v53, 1  ;;  %v1015_v38 = vld [vmem:[%s1886_s9] sm:$0xff]  ;;  %v1016_v39 = vld [vmem:[%s1886_s9 + $0x8] sm:$0xff]  ;;  %v1017_v40 = vld [vmem:[%s1886_s9 + $0x10] sm:$0xff]  ;;  %v1462_v41 = vmov 0.0|0.0  }
 0x37d   :  { %v1024_v53 = vld [vmem:[%s1886_s9 + $0x48] sm:$0xff] }
 0x37e   :  { %1322 = vmatprep.subr.bf16.mxu1 %v1321_v43  ;;  %v1018_v43 = vld [vmem:[%s1886_s9 + $0x18] sm:$0xff] }
 0x37f   :  { %1324 = vmatpush1.bf16.msra.mxu1 %v1323_v44  ;;  %v762_v45 = vld [vmem:[#allocation4 + $0x108] sm:$0xff] }
 0x380   :  { %785 = vmatprep.subr.mxu0 %v762_v45  ;;  %v1329_v45 = vpack.c.bf16 %v1018_v43, %v1017_v40 }
 0x381   :  { %786 = vmatpush1.msra.mxu0 %v615_v37 }
 0x382   :  { %1271 = vmatmul.mubr.msk.f32.vlgmr.msra.gmra.mrb[2].mxu0 %vm765_vm1, %v728_v46  ;;  %1325 = vmatprep.subr.bf16.mxu0 %v1462_v41 }
 0x383   :  { %v764_v47 = vld [vmem:[#allocation4 + $0x118] sm:$0xff] }
 0x384   :  { %856 = vmatprep.subr.mxu1 %v764_v47  ;;  %v1020_v47 = vld [vmem:[%s1886_s9 + $0x28] sm:$0xff] }
 0x385   :  { %857 = vmatpush1.msra.mxu1 %v723_v42  ;;  %v1326_v42 = vpack.c.bf16 %v1016_v39, %v1015_v38 }
 0x386   :  { %1272 = vmatmul.mubr.msk.f32.vlgmr.msra.gmra.mrb[2].mxu1 %vm765_vm1, %v728_v46  ;;  %1359 = vmatprep.subr.bf16.mxu1 %v1462_v41  ;;  %v1019_v46 = vld [vmem:[%s1886_s9 + $0x20] sm:$0xff] }
 0x387   :  { %1327 = vmatpush1.bf16.msra.mxu0 %v1326_v42  ;;  %1361 = vmatpush1.bf16.msra.mxu1 %v1326_v42  ;;  %v1332_v48 = vpack.c.bf16 %v1020_v47, %v1019_v46 }
 0x388   :  { %1328 = vmatprep.subr.bf16.mxu0 %v1462_v41  ;;  %1362 = vmatprep.subr.bf16.mxu1 %v1462_v41 }
 0x38b   :  { %1330 = vmatpush1.bf16.msra.mxu0 %v1329_v45  ;;  %1364 = vmatpush1.bf16.msra.mxu1 %v1329_v45 }
 0x38c   :  { %1331 = vmatprep.subr.bf16.mxu0 %v1462_v41  ;;  %1365 = vmatprep.subr.bf16.mxu1 %v1462_v41 }
 0x38f   :  { %1333 = vmatpush1.bf16.msra.mxu0 %v1332_v48  ;;  %1367 = vmatpush1.bf16.msra.mxu1 %v1332_v48 }
 0x390   :  { %1334 = vmatprep.subr.bf16.mxu0 %v1462_v41  ;;  %1368 = vmatprep.subr.bf16.mxu1 %v1462_v41 }
 0x393   :  { %1336 = vmatpush1.bf16.msra.mxu0 %v1335_v51  ;;  %1370 = vmatpush1.bf16.msra.mxu1 %v1335_v51 }
 0x394   :  { %1337 = vmatprep.subr.bf16.mxu0 %v1462_v41  ;;  %1371 = vmatprep.subr.bf16.mxu1 %v1462_v41 }
 0x455   :  { %v835_v54 = vpop.f32.mrb[2].mxu0 }
 0x456   :  { %v934_v55 = vsel %vm930_vm6, %v835_v54, 0.0  ;;  %v837_v56 = vpop.f32.mrb[3].mxu0 }
 0x457   :  { %v938_v57 = vmul.f32 %v934_v55, %v934_v55  ;;  %v935_v58 = vsel %vm931_vm7, %v837_v56, 0.0 }
 0x458   :  { %v939_v21 = vmul.f32 %v935_v58, %v935_v58  ;;  %v942_v59 = vadd.f32 %v935_v58, %v934_v55  ;;  %v1025_v55 = vld [vmem:[%s1886_s9 + $0x50] sm:$0xff]  ;;  %v1027_v58 = vld [vmem:[%s1886_s9 + $0x60] sm:$0xff] }
 0x459   :  { %v906_v25 = vpop.f32.mrb[2].mxu1 }
 0x45a   :  { %v948_v60 = vadd.f32 %v939_v21, %v938_v57  ;;  %v936_v27 = vsel %vm932_vm8, %v906_v25, 0.0  ;;  %v908_v61 = vpop.f32.mrb[3].mxu1  ;;  %v1028_v21 = vld [vmem:[%s1886_s9 + $0x68] sm:$0xff] }
 0x45b   :  { %v940_v62 = vmul.f32 %v936_v27, %v936_v27  ;;  %v943_v63 = vadd.f32 %v942_v59, %v936_v27  ;;  %v937_v28 = vsel %vm933_vm9, %v908_v61, 0.0  ;;  %v1344_v59 = vpack.c.bf16 %v1028_v21, %v1027_v58 }
 0x45c   :  { %v941_v0 = vmul.f32 %v937_v28, %v937_v28  ;;  %v944_v24 = vsel %vm514_vm3, %v937_v28, 0.0 }
 0x45d   :  { %v945_v30 = vadd.f32 %v944_v24, %v943_v63  ;;  %v949_v1 = vadd.f32 %v948_v60, %v940_v62  ;;  %v1030_v60 = vld [vmem:[%s1886_s9 + $0x78] sm:$0xff]  ;;  %v1032_v62 = vld [vmem:[%s1886_s9 + $0x88] sm:$0xff]  ;;  %v1033_v63 = vld [vmem:[%s1886_s9 + $0x90] sm:$0xff] }
 0x45e   :  { %v950_v2 = vsel %vm514_vm3, %v941_v0, 0.0  ;;  %v1034_v0 = vld [vmem:[%s1886_s9 + $0x98] sm:$0xff] }
 0x45f   :  { %946 = vadd.xlane.f32.xlu0 %v945_v30  ;;  %v951_v3 = vadd.f32 %v950_v2, %v949_v1  ;;  %v1353_v24 = vpack.c.bf16 %v1034_v0, %v1033_v63  ;;  %v1035_v1 = vld [vmem:[%s1886_s9 + $0xa0] sm:$0xff]  ;;  %v1036_v2 = vld [vmem:[%s1886_s9 + $0xa8] sm:$0x7] }
 0x461   :  { %952 = vadd.xlane.f32.xlu1 %v951_v3 }
 0x4ec   :  { %v947_v4 = vpop.xlane.xlu0 %946 }
 0x4ed   :  { %v954_v5 = vmul.f32 0.0034722222, %v947_v4  ;;  %v1356_v4 = vpack.c.bf16 %v1036_v2, %v1035_v1 }
 0x4ee   :  { %v953_v7 = vpop.xlane.xlu1 %952 }
 0x4ef   :  { %v956_v8 = vmul.f32 %v954_v5, %v954_v5  ;;  %v955_v9 = vmul.f32 0.0034722222, %v953_v7  ;;  %v1161_v7 = vld [vmem:[%s1886_s9 + $0xa8] sm:$0x7] }
 0x4f1   :  { %v957_v10 = vsub.f32 %v955_v9, %v956_v8  ;;  %v1390_v9 = vpack.c.bf16 %v1161_v7, %v1035_v1 }
 0x4f3   :  { %v959_v11 = vadd.f32 1e-05, %v957_v10 }
 0x4f5   :  { %1426 = vrsqrt.f32 %v959_v11 }
 0x4ff   :  { %v1427_v13 = vpop.eup %1426 }
 0x500   :  { %v961_v14 = vmul.f32 %v1427_v13, %v958_v12 }
 0x502   :  { %967 = vperm.xlu0 %1408, %v961_v14   ;;  %v963_v16 = vmul.f32 %v961_v14, %v954_v5 }
 0x504   :  { %v964_v17 = vsub.f32 %v962_v15, %v963_v16 }
 0x506   :  { %976 = vperm.xlu1 %1409, %v964_v17  }
 0x581   :  { %v968_v18 = vpop.permute.xlu0 %967 }
 0x582   :  { %v970_v19 = vmul.f32 %v968_v18, %v835_v54  ;;  %v971_v20 = vmul.f32 %v968_v18, %v837_v56  ;;  %v972_v22 = vmul.f32 %v968_v18, %v906_v25  ;;  %v973_v23 = vmul.f32 %v968_v18, %v908_v61  ;;  %v1026_v56 = vld [vmem:[%s1886_s9 + $0x58] sm:$0xff]  ;;  %v1029_v25 = vld [vmem:[%s1886_s9 + $0x70] sm:$0xff]  ;;  %v1031_v61 = vld [vmem:[%s1886_s9 + $0x80] sm:$0xff]  ;;  %s1464_s9 = smov [#allocation6]  }
 0x583   :  { %v1338_v54 = vpack.c.bf16 %v1024_v53, %v1023_v52  ;;  %v1341_v57 = vpack.c.bf16 %v1026_v56, %v1025_v55  ;;  %v1347_v27 = vpack.c.bf16 %v1030_v60, %v1029_v25  ;;  %v1350_v28 = vpack.c.bf16 %v1032_v62, %v1031_v61 }
 0x585   :  { %v977_v26 = vpop.permute.xlu1 %976  ;;  %1339 = vmatpush1.bf16.msra.mxu0 %v1338_v54  ;;  %1373 = vmatpush1.bf16.msra.mxu1 %v1338_v54 }
 0x586   :  { %v1736_v6 = vadd.f32 %v977_v26, %v970_v19  ;;  %v1738_v29 = vadd.f32 %v977_v26, %v971_v20  ;;  %v1740_v31 = vadd.f32 %v977_v26, %v972_v22  ;;  %v982_v32 = vadd.f32 %v977_v26, %v973_v23  ;;  %1340 = vmatprep.subr.bf16.mxu0 %v1462_v41 }
 0x587   :  { %1374 = vmatprep.subr.bf16.mxu1 %v1462_v41 }
 0x588   :  { %v983_v33 = vmax.f32 %v1736_v6, 0.0  ;;  %v984_v34 = vmax.f32 %v1738_v29, 0.0  ;;  %v985_v35 = vmax.f32 %v1740_v31, 0.0  ;;  %v986_v36 = vmax.f32 %v982_v32, 0.0 }
 0x589   :  { %1342 = vmatpush1.bf16.msra.mxu0 %v1341_v57  ;;  %1376 = vmatpush1.bf16.msra.mxu1 %v1341_v57 }
 0x58a   :  { %990 = vst.msk [vmem:[#allocation5 + $0x18] sm:$0xff] %vm514_vm3, %v986_v36  ;;  %997 = vrot.lane.b32.xlu1 %v984_v34, %s1453_s18  ;;  %v1410_v37 = vpack.i.bf16 %v985_v35, %v983_v33  ;;  %1343 = vmatprep.subr.bf16.mxu0 %v1462_v41 }
 0x58b   :  { %1377 = vmatprep.subr.bf16.mxu1 %v1462_v41 }
 0x58c   :  { %1411 = vrot.lane.b32.xlu0 %v1410_v37, %s1453_s18 }
 0x58d   :  { %1345 = vmatpush1.bf16.msra.mxu0 %v1344_v59  ;;  %1379 = vmatpush1.bf16.msra.mxu1 %v1344_v59 }
 0x58e   :  { %1346 = vmatprep.subr.bf16.mxu0 %v1462_v41  ;;  %1380 = vmatprep.subr.bf16.mxu1 %v1462_v41 }
 0x591   :  { %v1768_v44 = vld [vmem:[#allocation5 + $0x18] sm:$0xff]  ;;  %1348 = vmatpush1.bf16.msra.mxu0 %v1347_v27  ;;  %1382 = vmatpush1.bf16.msra.mxu1 %v1347_v27 }
 0x592   :  { %1122 = vrot.lane.b32.xlu0 %v1768_v44, %s1453_s18  ;;  %1349 = vmatprep.subr.bf16.mxu0 %v1462_v41 }
 0x593   :  { %1383 = vmatprep.subr.bf16.mxu1 %v1462_v41 }
 0x595   :  { %1351 = vmatpush1.bf16.msra.mxu0 %v1350_v28  ;;  %1385 = vmatpush1.bf16.msra.mxu1 %v1350_v28 }
 0x596   :  { %1352 = vmatprep.subr.bf16.mxu0 %v1462_v41  ;;  %1386 = vmatprep.subr.bf16.mxu1 %v1462_v41 }
 0x599   :  { %1354 = vmatpush1.bf16.msra.mxu0 %v1353_v24  ;;  %1388 = vmatpush1.bf16.msra.mxu1 %v1353_v24 }
 0x59a   :  { %1355 = vmatprep.subr.bf16.mxu0 %v1462_v41  ;;  %1389 = vmatprep.subr.bf16.mxu1 %v1462_v41 }
 0x59d   :  { %1358 = vmatpush1.bf16.msk.msra.mxu0 %vm1357_vm13, %v1356_v4  ;;  %1392 = vmatpush1.bf16.msk.msra.mxu1 %vm1357_vm13, %v1390_v9 }
 0x5fc   :  { %v998_v30 = vpop.permute.xlu1 %997 }
 0x5fd   :  { %v1003_v3 = vmax.f32 %v984_v34, %v998_v30 }
 0x5fe   :  { %v1412_v5 = vpop.permute.xlu0 %1411 }
 0x5ff   :  { %v1413_v8 = vunpack.i.l.bf16 %v1412_v5  ;;  %1008 = vrot.lane.b32.xlu0 %v1003_v3, %s1454_s0  ;;  %v1414_v10 = vunpack.i.h.bf16 %v1412_v5 }
 0x601   :  { %v999_v11 = vsel %vm50_vm2, %v1413_v8, %v998_v30 }
 0x602   :  { %v1002_v15 = vmax.f32 %v983_v33, %v999_v11 }
 0x604   :  { %v1123_v12 = vpop.permute.xlu0 %1122 }
 0x605   :  { %v1124_v13 = vsel %vm50_vm2, %v1414_v10, %v1123_v12  ;;  %v1128_v17 = vmax.f32 %v1768_v44, %v1123_v12 }
 0x606   :  { %v1127_v14 = vmax.f32 %v985_v35, %v1124_v13 }
 0x608   :  { %v1415_v16 = vpack.i.bf16 %v1127_v14, %v1002_v15 }
 0x60a   :  { %1416 = vrot.lane.b32.xlu1 %v1415_v16, %s1454_s0 }
 0x60e   :  { %1133 = vrot.lane.b32.xlu1 %v1128_v17, %s1454_s0  ;;  %s1245_s0 = sshll.u32 %s1464_s9, 4  ;;  %s1246_s0 = int_to_ptr.vmem [resolvable:$true] %s1245_s0 }
 0x60f   :  { %s1428_s28 = scalar_lea.vmem %s1246_s0, 256  ;;  %p1433_p1 = scmp.lt.s32.totalorder %s1246_s0, %s1246_s0 }
 0x610   :  { %p1429_p0 = scmp.ne.s32.totalorder %s1246_s0, %s1428_s28  ;;  %p1434_p2 = scmp.lt.s32.totalorder %s1428_s28, %s1428_s28 }
 0x612   :  { %p1435_p3 = por %p1434_p2, %p1433_p1 }
 0x614   :  { %p1436_p4 = pnand %p1435_p3, %p1429_p0 }
 0x671   :  { %v1009_v18 = vpop.permute.xlu0 %1008 }
 0x672   :  { %v1014_v19 = vmax.f32 %v1003_v3, %v1009_v18 }
 0x674   :  { %1274 = vmatprep.mubr.msk.f32.mxu0 %vm1037_vm14, %v1014_v19 }
 0x67c   :  { %v1417_v20 = vpop.permute.xlu1 %1416 }
 0x67d   :  { %v1418_v22 = vunpack.i.l.bf16 %v1417_v20  ;;  %v1419_v23 = vunpack.i.h.bf16 %v1417_v20 }
 0x67f   :  { %v1010_v26 = vsel %vm77_vm4, %v1418_v22, %v1009_v18 }
 0x680   :  { %v1013_v29 = vmax.f32 %v1002_v15, %v1010_v26  ;;  %v1134_v31 = vpop.permute.xlu1 %1133 }
 0x681   :  { %v1135_v6 = vsel %vm77_vm4, %v1419_v23, %v1134_v31  ;;  %v1139_v32 = vmax.f32 %v1128_v17, %v1134_v31 }
 0x682   :  { %v1138_v33 = vmax.f32 %v1127_v14, %v1135_v6  ;;  %1110 = vmatmul.mubr.f32.vlgmr.msra.gmra.mrb[4].mxu0 %v1013_v29 }
 0x683   :  { %1276 = vmatprep.mubr.msk.f32.mxu1 %vm1037_vm14, %v1139_v32 }
 0x684   :  { %1233 = vmatmul.mubr.f32.vlgmr.msra.gmra.mrb[4].mxu1 %v1138_v33 }
 0x755   :  { %v1111_v34 = vpop.f32.mrb[4].mxu0 }
 0x756   :  { %1115 = vst.msk [vmem:[#allocation6] sm:$0xff] %vm272_vm11, %v1111_v34  ;;  %v1113_v35 = vpop.f32.mrb[5].mxu0 }
 0x757   :  { %v1234_v36 = vpop.f32.mrb[4].mxu1 }
 0x758   :  { %1239 = vst.msk [vmem:[#allocation6 + $0x8] sm:$0xff] %vm272_vm11, %v1234_v36  ;;  %v1236_v37 = vpop.f32.mrb[5].mxu1 }
 0x759   :  { %1439 = shalt.err (!%p1436_p4)
}
 0x75a   :  { %s1440_s3 = scalar_lea.hbm %s1887_s10, 256 }
 0x75b   :  { %p1441_p5 = scmp.ne.s32.totalorder %s1887_s10, %s1440_s3  ;;  %p1444_p6 = scmp.lt.u32.totalorder %s1440_s3, %s1887_s10 }
 0x75d   :  { %p1446_p7 = pnand %p1444_p6, %p1441_p5 }
 0x75f   :  { %1449 = shalt.err (!%p1446_p7)
}
 0x760   :  { %s1465_s12 = smov 128   ;;  %s1466_s13 = smov 8  }
 0x761   :  { %1251 = dma.vmem_to_hbm [thread:$0]  %s1246_s0, 256, %s1887_s10, [#allocation7], %s1465_s12, %s1465_s12, %s1466_s13  }
 0x762   :  { %1450 = dma.done.wait [#allocation7], 256  }
 0x763   :  { %1451 = vsyncadd [#allocation7], 4294967040 }
 0x764   :  { %1255 = vsyncpa [#allocation7], 1 }

</bundles_post_ra>
